<compile_context>
chip_gen: v7x
topology: tpu7x:2x2x1
jax: 0.10.0
libtpu: 0.0.40
codegen_flags: <defaults>
</compile_context>

<pallas_src>
import jax
import jax.numpy as jnp
from jax import lax
from jax.experimental import pallas as pl
from jax.experimental.pallas import tpu as pltpu


def _round_up(v, m):
    return ((v + m - 1) // m) * m


def gru_head_kernel(x_ref, h0_ref, wih_ref, whh_ref, bi_ref, bhn_ref,
                    wfc_ref, bfc_ref, y_ref, hout_ref, gi_scr):
    T = x_ref.shape[0]
    B = x_ref.shape[1]
    hp = h0_ref.shape[-1]          # per-gate width, padded to a 128 multiple
    Tp = y_ref.shape[-1]           # time, padded to a 128 multiple (lane-dense)

    # ---- hoisted, loop-invariant work (all OFF the serial t->t+1 chain) ----
    wih = wih_ref[...]                                    # (d_in, 3hp)
    whh = whh_ref[...]                                    # (hp,  3hp) resident
    bi = bi_ref[...]                                      # (1, 3hp) fused bias
    bhn_b = jnp.broadcast_to(bhn_ref[...], (B, hp))       # hoisted broadcast
    wfc_b = jnp.broadcast_to(wfc_ref[...], (B, hp))       # hoisted broadcast
    bfc = bfc_ref[0, 0]
    t_lane = lax.broadcasted_iota(jnp.int32, (B, Tp), 1)  # hoisted one-hot iota

    # Pre-pass: input projection for every timestep BEFORE the recurrence.
    # No h-dependence -> independent iterations, MXU work pipelines freely.
    @pl.loop(0, T)
    def _(t):
        gi_scr[t] = (jnp.dot(x_ref[t], wih, preferred_element_type=jnp.float32)
                     + bi)                                # (B, 3hp) f32

    def step(t, carry):
        h_prev, y_acc = carry
        gi = gi_scr[t]                                            # (B, 3hp)
        gh = jnp.dot(h_prev.astype(whh.dtype), whh,
                     preferred_element_type=jnp.float32)          # (B, 3hp)

        # Tile-aligned gate slices: offsets 0 / hp / 2hp are 128 multiples.
        r = jax.nn.sigmoid(gi[:, :hp] + gh[:, :hp])
        z = jax.nn.sigmoid(gi[:, hp:2 * hp] + gh[:, hp:2 * hp])
        n = jnp.tanh(gi[:, 2 * hp:] + r * (gh[:, 2 * hp:] + bhn_b))
        h_new = (1.0 - z) * n + z * h_prev                        # (B, hp) f32

        # Fused fc_out: lane reduce that is not on the h_t->h_{t+1} chain,
        # accumulated into a lane-dense (B, Tp) buffer (no (T,B,h) stash).
        y_t = jnp.sum(h_new * wfc_b, axis=-1, keepdims=True) + bfc  # (B, 1)
        y_acc = jnp.where(t_lane == t, y_t, y_acc)
        return h_new, y_acc

    h0 = h0_ref[...].astype(jnp.float32)
    y0 = jnp.zeros((B, Tp), jnp.float32)
    h_final, y_all = lax.fori_loop(0, T, step, (h0, y0),
                                   unroll=min(T, 8))       # capped unroll

    y_ref[...] = y_all.astype(y_ref.dtype)                 # one dense store
    hout_ref[...] = h_final.astype(hout_ref.dtype)


def decoder_head_forward(x_in, h0, params, *, matmul_dtype=jnp.float32):
    """x_in: (B, T, d_in), h0: (1, B, h) -> (y: (B, T, 1), h_n: (1, B, h)).

    matmul_dtype: dtype of the MXU operands (x, W_ih, W_hh).  Hidden state,
    gate math and the fc accumulation always stay float32.
    """
    B, T, d_in = x_in.shape
    h = params["whh"].shape[0]
    hp = _round_up(h, 128)          # each gate gets its own 128-lane tile(s)
    Tp = _round_up(T, 128)          # lane-dense y output

    # Gate-padded layout: gate g of [r|z|n] occupies lanes [g*hp, g*hp + h);
    # padded lanes/rows are zero, and (with zero-padded h0) stay exactly zero
    # through the whole recurrence.
    def pad_gate_cols(w):                            # (rows, 3h) -> (rows, 3hp)
        out = jnp.zeros((w.shape[0], 3 * hp), w.dtype)
        for g in range(3):
            out = out.at[:, g * hp: g * hp + h].set(w[:, g * h:(g + 1) * h])
        return out

    wih_p = pad_gate_cols(params["wih"]).astype(matmul_dtype)       # (d_in,3hp)
    whh_p = jnp.zeros((hp, 3 * hp), jnp.float32)
    whh_p = whh_p.at[:h, :].set(pad_gate_cols(params["whh"]))
    whh_p = whh_p.astype(matmul_dtype)                               # (hp, 3hp)

    # Fold b_hr/b_hz into the input biases (added once in the hoisted input
    # projection); b_hn stays separate (inside the r-gated term).
    bih, bhh = params["bih"], params["bhh"]                          # (1, 3h)
    bi = jnp.concatenate([bih[:, :2 * h] + bhh[:, :2 * h], bih[:, 2 * h:]],
                         axis=-1)
    bi_p = pad_gate_cols(bi)                                         # (1, 3hp)
    bhn_p = jnp.zeros((1, hp), jnp.float32).at[:, :h].set(bhh[:, 2 * h:])
    wfc_p = jnp.zeros((1, hp), jnp.float32).at[:, :h].set(params["wfc"])

    x_tbd = jnp.transpose(x_in, (1, 0, 2)).astype(matmul_dtype)      # (T,B,d_in)
    h0_p = jnp.zeros((B, hp), jnp.float32).at[:, :h].set(h0[0])

    vmem = pl.BlockSpec(memory_space=pltpu.MemorySpace.VMEM)
    smem = pl.BlockSpec(memory_space=pltpu.MemorySpace.SMEM)

    # Single invocation; everything fits VMEM comfortably at these sizes.
    # TODO(synk): for large T switch to a time-chunked grid
    # (grid=(T//Tc,), "arbitrary", h carried in scratch) so BlockSpec
    # double-buffers x / gi chunks; for large B add a "parallel" batch axis.
    y_pad, h_pad = pl.pallas_call(
        gru_head_kernel,
        out_shape=(jax.ShapeDtypeStruct((B, Tp), jnp.float32),
                   jax.ShapeDtypeStruct((B, hp), jnp.float32)),
        in_specs=[vmem,   # x      (T, B, d_in)
                  vmem,   # h0     (B, hp)
                  vmem,   # wih    (d_in, 3hp)
                  vmem,   # whh    (hp, 3hp)
                  vmem,   # bi     (1, 3hp)
                  vmem,   # bhn    (1, hp)
                  vmem,   # wfc    (1, hp)
                  smem],  # bfc    (1, 1) scalar
        out_specs=(vmem, vmem),
        scratch_shapes=[pltpu.VMEM((T, B, 3 * hp), jnp.float32)],  # gi pre-pass
    )(x_tbd, h0_p, wih_p, whh_p, bi_p, bhn_p, wfc_p, params["bfc"])

    y = y_pad[:, :T, None].astype(x_in.dtype)        # (B, T, 1), no transpose
    h_n = h_pad[None, :, :h].astype(x_in.dtype)      # (1, B, h)
    return y, h_n


def reference_forward(x_in, h0, params):
    """Pure-JAX reference (lax.scan) matching PyTorch nn.GRU + nn.Linear."""
    h = params["whh"].shape[0]
    wih, whh = params["wih"], params["whh"]              # (d_in, 3h), (h, 3h)
    bih, bhh = params["bih"][0], params["bhh"][0]        # (3h,), (3h,)
    wfc, bfc = params["wfc"], params["bfc"]              # (1, h), (1, 1)

    def step(h_prev, x_t):
        gi = x_t @ wih + bih                             # (B, 3h)
        gh = h_prev @ whh + bhh                          # (B, 3h)
        r = jax.nn.sigmoid(gi[:, :h] + gh[:, :h])
        z = jax.nn.sigmoid(gi[:, h:2 * h] + gh[:, h:2 * h])
        n = jnp.tanh(gi[:, 2 * h:] + r * gh[:, 2 * h:])  # b_hn already in gh
        h_new = (1.0 - z) * n + z * h_prev
        return h_new, h_new

    x_tbd = jnp.transpose(x_in, (1, 0, 2))
    h_last, hs = lax.scan(step, h0[0], x_tbd)            # hs: (T, B, h)
    out = jnp.transpose(hs, (1, 0, 2))                   # (B, T, h)
    y = out @ wfc[0][:, None] + bfc[0, 0]                # (B, T, 1)
    return y, h_last[None]


def init_params(key, d_in, h):
    """Gate-concatenated layout, gate order [r, z, n] along the last dim."""
    ks = jax.random.split(key, 6)
    s = 1.0 / jnp.sqrt(h)
    return {
        "wih": jax.random.uniform(ks[0], (d_in, 3 * h), jnp.float32, -s, s),
        "whh": jax.random.uniform(ks[1], (h, 3 * h), jnp.float32, -s, s),
        "bih": jax.random.uniform(ks[2], (1, 3 * h), jnp.float32, -s, s),
        "bhh": jax.random.uniform(ks[3], (1, 3 * h), jnp.float32, -s, s),
        "wfc": jax.random.uniform(ks[4], (1, h), jnp.float32, -s, s),
        "bfc": jax.random.uniform(ks[5], (1, 1), jnp.float32, -s, s),
    }


if __name__ == "__main__":
    B, T, d_in, h = 2, 8, 4, 32
    key = jax.random.PRNGKey(0)
    k_p, k_x, k_h = jax.random.split(key, 3)

    params = init_params(k_p, d_in, h)
    x_in = jax.random.normal(k_x, (B, T, d_in), jnp.float32)
    h0 = jax.random.normal(k_h, (1, B, h), jnp.float32)

    y_ref, h_ref = reference_forward(x_in, h0, params)

    # f32 MXU operands: tight check against the f32 reference.
    y, h_out = decoder_head_forward(x_in, h0, params)
    jax.block_until_ready((y, h_out))
    assert y.shape == (B, T, 1) and h_out.shape == (1, B, h)
    assert jnp.allclose(y, y_ref, rtol=1e-4, atol=1e-4)
    assert jnp.allclose(h_out, h_ref, rtol=1e-4, atol=1e-4)

    # bf16 MXU operands (f32 state / gates / accumulation): looser tolerance.
    y16, h16 = decoder_head_forward(x_in, h0, params,
                                    matmul_dtype=jnp.bfloat16)
    jax.block_until_ready((y16, h16))
    assert jnp.allclose(y16, y_ref, rtol=1e-1, atol=1e-1)
    assert jnp.allclose(h16, h_ref, rtol=1e-1, atol=1e-1)

    print("KERNEL_OK")
</pallas_src>

<mosaic_0001>
module attributes {stable_mosaic.version = 11 : i64} {
  func.func @gru_head_kernel(%arg0: memref<8x2x4xf32, #tpu.memory_space<vmem>>, %arg1: memref<2x128xf32, #tpu.memory_space<vmem>>, %arg2: memref<4x384xf32, #tpu.memory_space<vmem>>, %arg3: memref<128x384xf32, #tpu.memory_space<vmem>>, %arg4: memref<1x384xf32, #tpu.memory_space<vmem>>, %arg5: memref<1x128xf32, #tpu.memory_space<vmem>>, %arg6: memref<1x128xf32, #tpu.memory_space<vmem>>, %arg7: memref<1x1xf32, #tpu.memory_space<smem>>, %arg8: memref<2x128xf32, #tpu.memory_space<vmem>>, %arg9: memref<2x128xf32, #tpu.memory_space<vmem>>, %arg10: memref<8x2x384xf32, #tpu.memory_space<vmem>>) attributes {dimension_semantics = [], scalar_prefetch = 0 : i64, scratch_operands = 1 : i64, tpu.core_type = #tpu.core_type<tc>} {
    %c0 = arith.constant 0 : index
    %c0_0 = arith.constant 0 : index
    %0 = vector.load %arg2[%c0, %c0_0] : memref<4x384xf32, #tpu.memory_space<vmem>>, vector<4x384xf32>
    %c0_1 = arith.constant 0 : index
    %c0_2 = arith.constant 0 : index
    %1 = vector.load %arg3[%c0_1, %c0_2] : memref<128x384xf32, #tpu.memory_space<vmem>>, vector<128x384xf32>
    %c0_3 = arith.constant 0 : index
    %c0_4 = arith.constant 0 : index
    %2 = vector.load %arg4[%c0_3, %c0_4] : memref<1x384xf32, #tpu.memory_space<vmem>>, vector<1x384xf32>
    %c0_5 = arith.constant 0 : index
    %c0_6 = arith.constant 0 : index
    %3 = vector.load %arg5[%c0_5, %c0_6] : memref<1x128xf32, #tpu.memory_space<vmem>>, vector<1x128xf32>
    %4 = vector.shape_cast %3 : vector<1x128xf32> to vector<1x128xf32>
    %5 = vector.broadcast %4 : vector<1x128xf32> to vector<2x128xf32>
    %c0_7 = arith.constant 0 : index
    %c0_8 = arith.constant 0 : index
    %6 = vector.load %arg6[%c0_7, %c0_8] : memref<1x128xf32, #tpu.memory_space<vmem>>, vector<1x128xf32>
    %7 = vector.shape_cast %6 : vector<1x128xf32> to vector<1x128xf32>
    %8 = vector.broadcast %7 : vector<1x128xf32> to vector<2x128xf32>
    %c0_9 = arith.constant 0 : index
    %c0_10 = arith.constant 0 : index
    %9 = memref.load %arg7[%c0_9, %c0_10] : memref<1x1xf32, #tpu.memory_space<smem>>
    %10 = tpu.iota {dimensions = array<i32: 1>} : vector<2x128xi32>
    %c0_i32 = arith.constant 0 : i32
    %c8_i32 = arith.constant 8 : i32
    %11 = arith.addi %c0_i32, %c8_i32 : i32
    %c1_i32 = arith.constant 1 : i32
    scf.for %arg11 = %c0_i32 to %11 step %c1_i32  : i32 {
      %c1_i32_77 = arith.constant 1 : i32
      %344 = arith.muli %arg11, %c1_i32_77 : i32
      %c0_i32_78 = arith.constant 0 : i32
      %345 = arith.addi %c0_i32_78, %344 : i32
      %346 = arith.index_cast %345 : i32 to index
      %c0_79 = arith.constant 0 : index
      %c0_80 = arith.constant 0 : index
      %347 = vector.load %arg0[%346, %c0_79, %c0_80] : memref<8x2x4xf32, #tpu.memory_space<vmem>>, vector<1x2x4xf32>
      %348 = vector.shape_cast %347 : vector<1x2x4xf32> to vector<2x4xf32>
      %cst_81 = arith.constant dense<0.000000e+00> : vector<2x384xf32>
      %349 = tpu.matmul %348, %0, %cst_81 {dimension_numbers = #tpu.dot_dimension_numbers<[1], [0], [0], [1], [0, 0, 1, 1], [], []>} : vector<2x4xf32>, vector<4x384xf32>, vector<2x384xf32> -> vector<2x384xf32>
      %350 = vector.broadcast %2 : vector<1x384xf32> to vector<2x384xf32>
      %351 = arith.addf %349, %350 : vector<2x384xf32>
      %352 = arith.index_cast %345 : i32 to index
      %c0_82 = arith.constant 0 : index
      %c0_83 = arith.constant 0 : index
      %353 = vector.load %arg10[%352, %c0_82, %c0_83] : memref<8x2x384xf32, #tpu.memory_space<vmem>>, vector<1x2x384xf32>
      %354 = vector.shape_cast %353 : vector<1x2x384xf32> to vector<2x384xf32>
      %355 = vector.shape_cast %351 : vector<2x384xf32> to vector<1x2x384xf32>
      tpu.vector_store %arg10[%352, %c0_82, %c0_83], %355 {strides = array<i32>} : memref<8x2x384xf32, #tpu.memory_space<vmem>>, vector<1x2x384xf32>,
    }
    %c8_i32_11 = arith.constant 8 : i32
    %c0_12 = arith.constant 0 : index
    %c0_13 = arith.constant 0 : index
    %12 = vector.load %arg1[%c0_12, %c0_13] : memref<2x128xf32, #tpu.memory_space<vmem>>, vector<2x128xf32>
    %cst = arith.constant 0.000000e+00 : f32
    %13 = vector.broadcast %cst : f32 to vector<2x128xf32>
    %c0_i32_14 = arith.constant 0 : i32
    %14 = arith.index_cast %c0_i32_14 : i32 to index
    %c0_15 = arith.constant 0 : index
    %c0_16 = arith.constant 0 : index
    %15 = vector.load %arg10[%14, %c0_15, %c0_16] : memref<8x2x384xf32, #tpu.memory_space<vmem>>, vector<1x2x384xf32>
    %16 = vector.shape_cast %15 : vector<1x2x384xf32> to vector<2x384xf32>
    %cst_17 = arith.constant dense<0.000000e+00> : vector<2x384xf32>
    %17 = tpu.matmul %12, %1, %cst_17 {dimension_numbers = #tpu.dot_dimension_numbers<[1], [0], [0], [1], [0, 0, 1, 1], [], []>} : vector<2x128xf32>, vector<128x384xf32>, vector<2x384xf32> -> vector<2x384xf32>
    %18 = vector.extract_strided_slice %16 {offsets = [0, 0], sizes = [2, 128], strides = [1, 1]} : vector<2x384xf32> to vector<2x128xf32>
    %19 = vector.extract_strided_slice %17 {offsets = [0, 0], sizes = [2, 128], strides = [1, 1]} : vector<2x384xf32> to vector<2x128xf32>
    %20 = arith.addf %18, %19 : vector<2x128xf32>
    %21 = arith.negf %20 : vector<2x128xf32>
    %22 = math.exp %21 : vector<2x128xf32>
    %cst_18 = arith.constant 1.000000e+00 : f32
    %23 = vector.broadcast %cst_18 : f32 to vector<2x128xf32>
    %24 = arith.addf %23, %22 : vector<2x128xf32>
    %25 = arith.divf %23, %24 : vector<2x128xf32>
    %26 = vector.extract_strided_slice %16 {offsets = [0, 128], sizes = [2, 128], strides = [1, 1]} : vector<2x384xf32> to vector<2x128xf32>
    %27 = vector.extract_strided_slice %17 {offsets = [0, 128], sizes = [2, 128], strides = [1, 1]} : vector<2x384xf32> to vector<2x128xf32>
    %28 = arith.addf %26, %27 : vector<2x128xf32>
    %29 = arith.negf %28 : vector<2x128xf32>
    %30 = math.exp %29 : vector<2x128xf32>
    %cst_19 = arith.constant 1.000000e+00 : f32
    %31 = vector.broadcast %cst_19 : f32 to vector<2x128xf32>
    %32 = arith.addf %31, %30 : vector<2x128xf32>
    %33 = arith.divf %31, %32 : vector<2x128xf32>
    %34 = vector.extract_strided_slice %16 {offsets = [0, 256], sizes = [2, 128], strides = [1, 1]} : vector<2x384xf32> to vector<2x128xf32>
    %35 = vector.extract_strided_slice %17 {offsets = [0, 256], sizes = [2, 128], strides = [1, 1]} : vector<2x384xf32> to vector<2x128xf32>
    %36 = arith.addf %35, %5 : vector<2x128xf32>
    %37 = arith.mulf %25, %36 : vector<2x128xf32>
    %38 = arith.addf %34, %37 : vector<2x128xf32>
    %39 = math.tanh %38 : vector<2x128xf32>
    %cst_20 = arith.constant 1.000000e+00 : f32
    %40 = vector.broadcast %cst_20 : f32 to vector<2x128xf32>
    %41 = arith.subf %40, %33 : vector<2x128xf32>
    %42 = arith.mulf %41, %39 : vector<2x128xf32>
    %43 = arith.mulf %33, %12 : vector<2x128xf32>
    %44 = arith.addf %42, %43 : vector<2x128xf32>
    %45 = arith.mulf %44, %8 : vector<2x128xf32>
    %cst_21 = arith.constant dense<0.000000e+00> : vector<2xf32>
    %46 = vector.multi_reduction <add>, %45, %cst_21 [1] : vector<2x128xf32> to vector<2xf32>
    %47 = vector.shape_cast %46 : vector<2xf32> to vector<2x1xf32>
    %48 = vector.broadcast %9 : f32 to vector<2x1xf32>
    %49 = arith.addf %47, %48 : vector<2x1xf32>
    %50 = vector.broadcast %c0_i32_14 : i32 to vector<2x128xi32>
    %51 = arith.cmpi eq, %10, %50 : vector<2x128xi32>
    %52 = vector.shape_cast %49 : vector<2x1xf32> to vector<2x1xf32>
    %53 = vector.broadcast %52 : vector<2x1xf32> to vector<2x128xf32>
    %54 = arith.select %51, %53, %13 : vector<2x128xi1>, vector<2x128xf32>
    %c1_i32_22 = arith.constant 1 : i32
    %55 = arith.index_cast %c1_i32_22 : i32 to index
    %c0_23 = arith.constant 0 : index
    %c0_24 = arith.constant 0 : index
    %56 = vector.load %arg10[%55, %c0_23, %c0_24] : memref<8x2x384xf32, #tpu.memory_space<vmem>>, vector<1x2x384xf32>
    %57 = vector.shape_cast %56 : vector<1x2x384xf32> to vector<2x384xf32>
    %cst_25 = arith.constant dense<0.000000e+00> : vector<2x384xf32>
    %58 = tpu.matmul %44, %1, %cst_25 {dimension_numbers = #tpu.dot_dimension_numbers<[1], [0], [0], [1], [0, 0, 1, 1], [], []>} : vector<2x128xf32>, vector<128x384xf32>, vector<2x384xf32> -> vector<2x384xf32>
    %59 = vector.extract_strided_slice %57 {offsets = [0, 0], sizes = [2, 128], strides = [1, 1]} : vector<2x384xf32> to vector<2x128xf32>
    %60 = vector.extract_strided_slice %58 {offsets = [0, 0], sizes = [2, 128], strides = [1, 1]} : vector<2x384xf32> to vector<2x128xf32>
    %61 = arith.addf %59, %60 : vector<2x128xf32>
    %62 = arith.negf %61 : vector<2x128xf32>
    %63 = math.exp %62 : vector<2x128xf32>
    %cst_26 = arith.constant 1.000000e+00 : f32
    %64 = vector.broadcast %cst_26 : f32 to vector<2x128xf32>
    %65 = arith.addf %64, %63 : vector<2x128xf32>
    %66 = arith.divf %64, %65 : vector<2x128xf32>
    %67 = vector.extract_strided_slice %57 {offsets = [0, 128], sizes = [2, 128], strides = [1, 1]} : vector<2x384xf32> to vector<2x128xf32>
    %68 = vector.extract_strided_slice %58 {offsets = [0, 128], sizes = [2, 128], strides = [1, 1]} : vector<2x384xf32> to vector<2x128xf32>
    %69 = arith.addf %67, %68 : vector<2x128xf32>
    %70 = arith.negf %69 : vector<2x128xf32>
    %71 = math.exp %70 : vector<2x128xf32>
    %cst_27 = arith.constant 1.000000e+00 : f32
    %72 = vector.broadcast %cst_27 : f32 to vector<2x128xf32>
    %73 = arith.addf %72, %71 : vector<2x128xf32>
    %74 = arith.divf %72, %73 : vector<2x128xf32>
    %75 = vector.extract_strided_slice %57 {offsets = [0, 256], sizes = [2, 128], strides = [1, 1]} : vector<2x384xf32> to vector<2x128xf32>
    %76 = vector.extract_strided_slice %58 {offsets = [0, 256], sizes = [2, 128], strides = [1, 1]} : vector<2x384xf32> to vector<2x128xf32>
    %77 = arith.addf %76, %5 : vector<2x128xf32>
    %78 = arith.mulf %66, %77 : vector<2x128xf32>
    %79 = arith.addf %75, %78 : vector<2x128xf32>
    %80 = math.tanh %79 : vector<2x128xf32>
    %cst_28 = arith.constant 1.000000e+00 : f32
    %81 = vector.broadcast %cst_28 : f32 to vector<2x128xf32>
    %82 = arith.subf %81, %74 : vector<2x128xf32>
    %83 = arith.mulf %82, %80 : vector<2x128xf32>
    %84 = arith.mulf %74, %44 : vector<2x128xf32>
    %85 = arith.addf %83, %84 : vector<2x128xf32>
    %86 = arith.mulf %85, %8 : vector<2x128xf32>
    %cst_29 = arith.constant dense<0.000000e+00> : vector<2xf32>
    %87 = vector.multi_reduction <add>, %86, %cst_29 [1] : vector<2x128xf32> to vector<2xf32>
    %88 = vector.shape_cast %87 : vector<2xf32> to vector<2x1xf32>
    %89 = vector.broadcast %9 : f32 to vector<2x1xf32>
    %90 = arith.addf %88, %89 : vector<2x1xf32>
    %91 = vector.broadcast %c1_i32_22 : i32 to vector<2x128xi32>
    %92 = arith.cmpi eq, %10, %91 : vector<2x128xi32>
    %93 = vector.shape_cast %90 : vector<2x1xf32> to vector<2x1xf32>
    %94 = vector.broadcast %93 : vector<2x1xf32> to vector<2x128xf32>
    %95 = arith.select %92, %94, %54 : vector<2x128xi1>, vector<2x128xf32>
    %c2_i32 = arith.constant 2 : i32
    %96 = arith.index_cast %c2_i32 : i32 to index
    %c0_30 = arith.constant 0 : index
    %c0_31 = arith.constant 0 : index
    %97 = vector.load %arg10[%96, %c0_30, %c0_31] : memref<8x2x384xf32, #tpu.memory_space<vmem>>, vector<1x2x384xf32>
    %98 = vector.shape_cast %97 : vector<1x2x384xf32> to vector<2x384xf32>
    %cst_32 = arith.constant dense<0.000000e+00> : vector<2x384xf32>
    %99 = tpu.matmul %85, %1, %cst_32 {dimension_numbers = #tpu.dot_dimension_numbers<[1], [0], [0], [1], [0, 0, 1, 1], [], []>} : vector<2x128xf32>, vector<128x384xf32>, vector<2x384xf32> -> vector<2x384xf32>
    %100 = vector.extract_strided_slice %98 {offsets = [0, 0], sizes = [2, 128], strides = [1, 1]} : vector<2x384xf32> to vector<2x128xf32>
    %101 = vector.extract_strided_slice %99 {offsets = [0, 0], sizes = [2, 128], strides = [1, 1]} : vector<2x384xf32> to vector<2x128xf32>
    %102 = arith.addf %100, %101 : vector<2x128xf32>
    %103 = arith.negf %102 : vector<2x128xf32>
    %104 = math.exp %103 : vector<2x128xf32>
    %cst_33 = arith.constant 1.000000e+00 : f32
    %105 = vector.broadcast %cst_33 : f32 to vector<2x128xf32>
    %106 = arith.addf %105, %104 : vector<2x128xf32>
    %107 = arith.divf %105, %106 : vector<2x128xf32>
    %108 = vector.extract_strided_slice %98 {offsets = [0, 128], sizes = [2, 128], strides = [1, 1]} : vector<2x384xf32> to vector<2x128xf32>
    %109 = vector.extract_strided_slice %99 {offsets = [0, 128], sizes = [2, 128], strides = [1, 1]} : vector<2x384xf32> to vector<2x128xf32>
    %110 = arith.addf %108, %109 : vector<2x128xf32>
    %111 = arith.negf %110 : vector<2x128xf32>
    %112 = math.exp %111 : vector<2x128xf32>
    %cst_34 = arith.constant 1.000000e+00 : f32
    %113 = vector.broadcast %cst_34 : f32 to vector<2x128xf32>
    %114 = arith.addf %113, %112 : vector<2x128xf32>
    %115 = arith.divf %113, %114 : vector<2x128xf32>
    %116 = vector.extract_strided_slice %98 {offsets = [0, 256], sizes = [2, 128], strides = [1, 1]} : vector<2x384xf32> to vector<2x128xf32>
    %117 = vector.extract_strided_slice %99 {offsets = [0, 256], sizes = [2, 128], strides = [1, 1]} : vector<2x384xf32> to vector<2x128xf32>
    %118 = arith.addf %117, %5 : vector<2x128xf32>
    %119 = arith.mulf %107, %118 : vector<2x128xf32>
    %120 = arith.addf %116, %119 : vector<2x128xf32>
    %121 = math.tanh %120 : vector<2x128xf32>
    %cst_35 = arith.constant 1.000000e+00 : f32
    %122 = vector.broadcast %cst_35 : f32 to vector<2x128xf32>
    %123 = arith.subf %122, %115 : vector<2x128xf32>
    %124 = arith.mulf %123, %121 : vector<2x128xf32>
    %125 = arith.mulf %115, %85 : vector<2x128xf32>
    %126 = arith.addf %124, %125 : vector<2x128xf32>
    %127 = arith.mulf %126, %8 : vector<2x128xf32>
    %cst_36 = arith.constant dense<0.000000e+00> : vector<2xf32>
    %128 = vector.multi_reduction <add>, %127, %cst_36 [1] : vector<2x128xf32> to vector<2xf32>
    %129 = vector.shape_cast %128 : vector<2xf32> to vector<2x1xf32>
    %130 = vector.broadcast %9 : f32 to vector<2x1xf32>
    %131 = arith.addf %129, %130 : vector<2x1xf32>
    %132 = vector.broadcast %c2_i32 : i32 to vector<2x128xi32>
    %133 = arith.cmpi eq, %10, %132 : vector<2x128xi32>
    %134 = vector.shape_cast %131 : vector<2x1xf32> to vector<2x1xf32>
    %135 = vector.broadcast %134 : vector<2x1xf32> to vector<2x128xf32>
    %136 = arith.select %133, %135, %95 : vector<2x128xi1>, vector<2x128xf32>
    %c3_i32 = arith.constant 3 : i32
    %137 = arith.index_cast %c3_i32 : i32 to index
    %c0_37 = arith.constant 0 : index
    %c0_38 = arith.constant 0 : index
    %138 = vector.load %arg10[%137, %c0_37, %c0_38] : memref<8x2x384xf32, #tpu.memory_space<vmem>>, vector<1x2x384xf32>
    %139 = vector.shape_cast %138 : vector<1x2x384xf32> to vector<2x384xf32>
    %cst_39 = arith.constant dense<0.000000e+00> : vector<2x384xf32>
    %140 = tpu.matmul %126, %1, %cst_39 {dimension_numbers = #tpu.dot_dimension_numbers<[1], [0], [0], [1], [0, 0, 1, 1], [], []>} : vector<2x128xf32>, vector<128x384xf32>, vector<2x384xf32> -> vector<2x384xf32>
    %141 = vector.extract_strided_slice %139 {offsets = [0, 0], sizes = [2, 128], strides = [1, 1]} : vector<2x384xf32> to vector<2x128xf32>
    %142 = vector.extract_strided_slice %140 {offsets = [0, 0], sizes = [2, 128], strides = [1, 1]} : vector<2x384xf32> to vector<2x128xf32>
    %143 = arith.addf %141, %142 : vector<2x128xf32>
    %144 = arith.negf %143 : vector<2x128xf32>
    %145 = math.exp %144 : vector<2x128xf32>
    %cst_40 = arith.constant 1.000000e+00 : f32
    %146 = vector.broadcast %cst_40 : f32 to vector<2x128xf32>
    %147 = arith.addf %146, %145 : vector<2x128xf32>
    %148 = arith.divf %146, %147 : vector<2x128xf32>
    %149 = vector.extract_strided_slice %139 {offsets = [0, 128], sizes = [2, 128], strides = [1, 1]} : vector<2x384xf32> to vector<2x128xf32>
    %150 = vector.extract_strided_slice %140 {offsets = [0, 128], sizes = [2, 128], strides = [1, 1]} : vector<2x384xf32> to vector<2x128xf32>
    %151 = arith.addf %149, %150 : vector<2x128xf32>
    %152 = arith.negf %151 : vector<2x128xf32>
    %153 = math.exp %152 : vector<2x128xf32>
    %cst_41 = arith.constant 1.000000e+00 : f32
    %154 = vector.broadcast %cst_41 : f32 to vector<2x128xf32>
    %155 = arith.addf %154, %153 : vector<2x128xf32>
    %156 = arith.divf %154, %155 : vector<2x128xf32>
    %157 = vector.extract_strided_slice %139 {offsets = [0, 256], sizes = [2, 128], strides = [1, 1]} : vector<2x384xf32> to vector<2x128xf32>
    %158 = vector.extract_strided_slice %140 {offsets = [0, 256], sizes = [2, 128], strides = [1, 1]} : vector<2x384xf32> to vector<2x128xf32>
    %159 = arith.addf %158, %5 : vector<2x128xf32>
    %160 = arith.mulf %148, %159 : vector<2x128xf32>
    %161 = arith.addf %157, %160 : vector<2x128xf32>
    %162 = math.tanh %161 : vector<2x128xf32>
    %cst_42 = arith.constant 1.000000e+00 : f32
    %163 = vector.broadcast %cst_42 : f32 to vector<2x128xf32>
    %164 = arith.subf %163, %156 : vector<2x128xf32>
    %165 = arith.mulf %164, %162 : vector<2x128xf32>
    %166 = arith.mulf %156, %126 : vector<2x128xf32>
    %167 = arith.addf %165, %166 : vector<2x128xf32>
    %168 = arith.mulf %167, %8 : vector<2x128xf32>
    %cst_43 = arith.constant dense<0.000000e+00> : vector<2xf32>
    %169 = vector.multi_reduction <add>, %168, %cst_43 [1] : vector<2x128xf32> to vector<2xf32>
    %170 = vector.shape_cast %169 : vector<2xf32> to vector<2x1xf32>
    %171 = vector.broadcast %9 : f32 to vector<2x1xf32>
    %172 = arith.addf %170, %171 : vector<2x1xf32>
    %173 = vector.broadcast %c3_i32 : i32 to vector<2x128xi32>
    %174 = arith.cmpi eq, %10, %173 : vector<2x128xi32>
    %175 = vector.shape_cast %172 : vector<2x1xf32> to vector<2x1xf32>
    %176 = vector.broadcast %175 : vector<2x1xf32> to vector<2x128xf32>
    %177 = arith.select %174, %176, %136 : vector<2x128xi1>, vector<2x128xf32>
    %c4_i32 = arith.constant 4 : i32
    %178 = arith.index_cast %c4_i32 : i32 to index
    %c0_44 = arith.constant 0 : index
    %c0_45 = arith.constant 0 : index
    %179 = vector.load %arg10[%178, %c0_44, %c0_45] : memref<8x2x384xf32, #tpu.memory_space<vmem>>, vector<1x2x384xf32>
    %180 = vector.shape_cast %179 : vector<1x2x384xf32> to vector<2x384xf32>
    %cst_46 = arith.constant dense<0.000000e+00> : vector<2x384xf32>
    %181 = tpu.matmul %167, %1, %cst_46 {dimension_numbers = #tpu.dot_dimension_numbers<[1], [0], [0], [1], [0, 0, 1, 1], [], []>} : vector<2x128xf32>, vector<128x384xf32>, vector<2x384xf32> -> vector<2x384xf32>
    %182 = vector.extract_strided_slice %180 {offsets = [0, 0], sizes = [2, 128], strides = [1, 1]} : vector<2x384xf32> to vector<2x128xf32>
    %183 = vector.extract_strided_slice %181 {offsets = [0, 0], sizes = [2, 128], strides = [1, 1]} : vector<2x384xf32> to vector<2x128xf32>
    %184 = arith.addf %182, %183 : vector<2x128xf32>
    %185 = arith.negf %184 : vector<2x128xf32>
    %186 = math.exp %185 : vector<2x128xf32>
    %cst_47 = arith.constant 1.000000e+00 : f32
    %187 = vector.broadcast %cst_47 : f32 to vector<2x128xf32>
    %188 = arith.addf %187, %186 : vector<2x128xf32>
    %189 = arith.divf %187, %188 : vector<2x128xf32>
    %190 = vector.extract_strided_slice %180 {offsets = [0, 128], sizes = [2, 128], strides = [1, 1]} : vector<2x384xf32> to vector<2x128xf32>
    %191 = vector.extract_strided_slice %181 {offsets = [0, 128], sizes = [2, 128], strides = [1, 1]} : vector<2x384xf32> to vector<2x128xf32>
    %192 = arith.addf %190, %191 : vector<2x128xf32>
    %193 = arith.negf %192 : vector<2x128xf32>
    %194 = math.exp %193 : vector<2x128xf32>
    %cst_48 = arith.constant 1.000000e+00 : f32
    %195 = vector.broadcast %cst_48 : f32 to vector<2x128xf32>
    %196 = arith.addf %195, %194 : vector<2x128xf32>
    %197 = arith.divf %195, %196 : vector<2x128xf32>
    %198 = vector.extract_strided_slice %180 {offsets = [0, 256], sizes = [2, 128], strides = [1, 1]} : vector<2x384xf32> to vector<2x128xf32>
    %199 = vector.extract_strided_slice %181 {offsets = [0, 256], sizes = [2, 128], strides = [1, 1]} : vector<2x384xf32> to vector<2x128xf32>
    %200 = arith.addf %199, %5 : vector<2x128xf32>
    %201 = arith.mulf %189, %200 : vector<2x128xf32>
    %202 = arith.addf %198, %201 : vector<2x128xf32>
    %203 = math.tanh %202 : vector<2x128xf32>
    %cst_49 = arith.constant 1.000000e+00 : f32
    %204 = vector.broadcast %cst_49 : f32 to vector<2x128xf32>
    %205 = arith.subf %204, %197 : vector<2x128xf32>
    %206 = arith.mulf %205, %203 : vector<2x128xf32>
    %207 = arith.mulf %197, %167 : vector<2x128xf32>
    %208 = arith.addf %206, %207 : vector<2x128xf32>
    %209 = arith.mulf %208, %8 : vector<2x128xf32>
    %cst_50 = arith.constant dense<0.000000e+00> : vector<2xf32>
    %210 = vector.multi_reduction <add>, %209, %cst_50 [1] : vector<2x128xf32> to vector<2xf32>
    %211 = vector.shape_cast %210 : vector<2xf32> to vector<2x1xf32>
    %212 = vector.broadcast %9 : f32 to vector<2x1xf32>
    %213 = arith.addf %211, %212 : vector<2x1xf32>
    %214 = vector.broadcast %c4_i32 : i32 to vector<2x128xi32>
    %215 = arith.cmpi eq, %10, %214 : vector<2x128xi32>
    %216 = vector.shape_cast %213 : vector<2x1xf32> to vector<2x1xf32>
    %217 = vector.broadcast %216 : vector<2x1xf32> to vector<2x128xf32>
    %218 = arith.select %215, %217, %177 : vector<2x128xi1>, vector<2x128xf32>
    %c5_i32 = arith.constant 5 : i32
    %219 = arith.index_cast %c5_i32 : i32 to index
    %c0_51 = arith.constant 0 : index
    %c0_52 = arith.constant 0 : index
    %220 = vector.load %arg10[%219, %c0_51, %c0_52] : memref<8x2x384xf32, #tpu.memory_space<vmem>>, vector<1x2x384xf32>
    %221 = vector.shape_cast %220 : vector<1x2x384xf32> to vector<2x384xf32>
    %cst_53 = arith.constant dense<0.000000e+00> : vector<2x384xf32>
    %222 = tpu.matmul %208, %1, %cst_53 {dimension_numbers = #tpu.dot_dimension_numbers<[1], [0], [0], [1], [0, 0, 1, 1], [], []>} : vector<2x128xf32>, vector<128x384xf32>, vector<2x384xf32> -> vector<2x384xf32>
    %223 = vector.extract_strided_slice %221 {offsets = [0, 0], sizes = [2, 128], strides = [1, 1]} : vector<2x384xf32> to vector<2x128xf32>
    %224 = vector.extract_strided_slice %222 {offsets = [0, 0], sizes = [2, 128], strides = [1, 1]} : vector<2x384xf32> to vector<2x128xf32>
    %225 = arith.addf %223, %224 : vector<2x128xf32>
    %226 = arith.negf %225 : vector<2x128xf32>
    %227 = math.exp %226 : vector<2x128xf32>
    %cst_54 = arith.constant 1.000000e+00 : f32
    %228 = vector.broadcast %cst_54 : f32 to vector<2x128xf32>
    %229 = arith.addf %228, %227 : vector<2x128xf32>
    %230 = arith.divf %228, %229 : vector<2x128xf32>
    %231 = vector.extract_strided_slice %221 {offsets = [0, 128], sizes = [2, 128], strides = [1, 1]} : vector<2x384xf32> to vector<2x128xf32>
    %232 = vector.extract_strided_slice %222 {offsets = [0, 128], sizes = [2, 128], strides = [1, 1]} : vector<2x384xf32> to vector<2x128xf32>
    %233 = arith.addf %231, %232 : vector<2x128xf32>
    %234 = arith.negf %233 : vector<2x128xf32>
    %235 = math.exp %234 : vector<2x128xf32>
    %cst_55 = arith.constant 1.000000e+00 : f32
    %236 = vector.broadcast %cst_55 : f32 to vector<2x128xf32>
    %237 = arith.addf %236, %235 : vector<2x128xf32>
    %238 = arith.divf %236, %237 : vector<2x128xf32>
    %239 = vector.extract_strided_slice %221 {offsets = [0, 256], sizes = [2, 128], strides = [1, 1]} : vector<2x384xf32> to vector<2x128xf32>
    %240 = vector.extract_strided_slice %222 {offsets = [0, 256], sizes = [2, 128], strides = [1, 1]} : vector<2x384xf32> to vector<2x128xf32>
    %241 = arith.addf %240, %5 : vector<2x128xf32>
    %242 = arith.mulf %230, %241 : vector<2x128xf32>
    %243 = arith.addf %239, %242 : vector<2x128xf32>
    %244 = math.tanh %243 : vector<2x128xf32>
    %cst_56 = arith.constant 1.000000e+00 : f32
    %245 = vector.broadcast %cst_56 : f32 to vector<2x128xf32>
    %246 = arith.subf %245, %238 : vector<2x128xf32>
    %247 = arith.mulf %246, %244 : vector<2x128xf32>
    %248 = arith.mulf %238, %208 : vector<2x128xf32>
    %249 = arith.addf %247, %248 : vector<2x128xf32>
    %250 = arith.mulf %249, %8 : vector<2x128xf32>
    %cst_57 = arith.constant dense<0.000000e+00> : vector<2xf32>
    %251 = vector.multi_reduction <add>, %250, %cst_57 [1] : vector<2x128xf32> to vector<2xf32>
    %252 = vector.shape_cast %251 : vector<2xf32> to vector<2x1xf32>
    %253 = vector.broadcast %9 : f32 to vector<2x1xf32>
    %254 = arith.addf %252, %253 : vector<2x1xf32>
    %255 = vector.broadcast %c5_i32 : i32 to vector<2x128xi32>
    %256 = arith.cmpi eq, %10, %255 : vector<2x128xi32>
    %257 = vector.shape_cast %254 : vector<2x1xf32> to vector<2x1xf32>
    %258 = vector.broadcast %257 : vector<2x1xf32> to vector<2x128xf32>
    %259 = arith.select %256, %258, %218 : vector<2x128xi1>, vector<2x128xf32>
    %c6_i32 = arith.constant 6 : i32
    %260 = arith.index_cast %c6_i32 : i32 to index
    %c0_58 = arith.constant 0 : index
    %c0_59 = arith.constant 0 : index
    %261 = vector.load %arg10[%260, %c0_58, %c0_59] : memref<8x2x384xf32, #tpu.memory_space<vmem>>, vector<1x2x384xf32>
    %262 = vector.shape_cast %261 : vector<1x2x384xf32> to vector<2x384xf32>
    %cst_60 = arith.constant dense<0.000000e+00> : vector<2x384xf32>
    %263 = tpu.matmul %249, %1, %cst_60 {dimension_numbers = #tpu.dot_dimension_numbers<[1], [0], [0], [1], [0, 0, 1, 1], [], []>} : vector<2x128xf32>, vector<128x384xf32>, vector<2x384xf32> -> vector<2x384xf32>
    %264 = vector.extract_strided_slice %262 {offsets = [0, 0], sizes = [2, 128], strides = [1, 1]} : vector<2x384xf32> to vector<2x128xf32>
    %265 = vector.extract_strided_slice %263 {offsets = [0, 0], sizes = [2, 128], strides = [1, 1]} : vector<2x384xf32> to vector<2x128xf32>
    %266 = arith.addf %264, %265 : vector<2x128xf32>
    %267 = arith.negf %266 : vector<2x128xf32>
    %268 = math.exp %267 : vector<2x128xf32>
    %cst_61 = arith.constant 1.000000e+00 : f32
    %269 = vector.broadcast %cst_61 : f32 to vector<2x128xf32>
    %270 = arith.addf %269, %268 : vector<2x128xf32>
    %271 = arith.divf %269, %270 : vector<2x128xf32>
    %272 = vector.extract_strided_slice %262 {offsets = [0, 128], sizes = [2, 128], strides = [1, 1]} : vector<2x384xf32> to vector<2x128xf32>
    %273 = vector.extract_strided_slice %263 {offsets = [0, 128], sizes = [2, 128], strides = [1, 1]} : vector<2x384xf32> to vector<2x128xf32>
    %274 = arith.addf %272, %273 : vector<2x128xf32>
    %275 = arith.negf %274 : vector<2x128xf32>
    %276 = math.exp %275 : vector<2x128xf32>
    %cst_62 = arith.constant 1.000000e+00 : f32
    %277 = vector.broadcast %cst_62 : f32 to vector<2x128xf32>
    %278 = arith.addf %277, %276 : vector<2x128xf32>
    %279 = arith.divf %277, %278 : vector<2x128xf32>
    %280 = vector.extract_strided_slice %262 {offsets = [0, 256], sizes = [2, 128], strides = [1, 1]} : vector<2x384xf32> to vector<2x128xf32>
    %281 = vector.extract_strided_slice %263 {offsets = [0, 256], sizes = [2, 128], strides = [1, 1]} : vector<2x384xf32> to vector<2x128xf32>
    %282 = arith.addf %281, %5 : vector<2x128xf32>
    %283 = arith.mulf %271, %282 : vector<2x128xf32>
    %284 = arith.addf %280, %283 : vector<2x128xf32>
    %285 = math.tanh %284 : vector<2x128xf32>
    %cst_63 = arith.constant 1.000000e+00 : f32
    %286 = vector.broadcast %cst_63 : f32 to vector<2x128xf32>
    %287 = arith.subf %286, %279 : vector<2x128xf32>
    %288 = arith.mulf %287, %285 : vector<2x128xf32>
    %289 = arith.mulf %279, %249 : vector<2x128xf32>
    %290 = arith.addf %288, %289 : vector<2x128xf32>
    %291 = arith.mulf %290, %8 : vector<2x128xf32>
    %cst_64 = arith.constant dense<0.000000e+00> : vector<2xf32>
    %292 = vector.multi_reduction <add>, %291, %cst_64 [1] : vector<2x128xf32> to vector<2xf32>
    %293 = vector.shape_cast %292 : vector<2xf32> to vector<2x1xf32>
    %294 = vector.broadcast %9 : f32 to vector<2x1xf32>
    %295 = arith.addf %293, %294 : vector<2x1xf32>
    %296 = vector.broadcast %c6_i32 : i32 to vector<2x128xi32>
    %297 = arith.cmpi eq, %10, %296 : vector<2x128xi32>
    %298 = vector.shape_cast %295 : vector<2x1xf32> to vector<2x1xf32>
    %299 = vector.broadcast %298 : vector<2x1xf32> to vector<2x128xf32>
    %300 = arith.select %297, %299, %259 : vector<2x128xi1>, vector<2x128xf32>
    %c7_i32 = arith.constant 7 : i32
    %301 = arith.index_cast %c7_i32 : i32 to index
    %c0_65 = arith.constant 0 : index
    %c0_66 = arith.constant 0 : index
    %302 = vector.load %arg10[%301, %c0_65, %c0_66] : memref<8x2x384xf32, #tpu.memory_space<vmem>>, vector<1x2x384xf32>
    %303 = vector.shape_cast %302 : vector<1x2x384xf32> to vector<2x384xf32>
    %cst_67 = arith.constant dense<0.000000e+00> : vector<2x384xf32>
    %304 = tpu.matmul %290, %1, %cst_67 {dimension_numbers = #tpu.dot_dimension_numbers<[1], [0], [0], [1], [0, 0, 1, 1], [], []>} : vector<2x128xf32>, vector<128x384xf32>, vector<2x384xf32> -> vector<2x384xf32>
    %305 = vector.extract_strided_slice %303 {offsets = [0, 0], sizes = [2, 128], strides = [1, 1]} : vector<2x384xf32> to vector<2x128xf32>
    %306 = vector.extract_strided_slice %304 {offsets = [0, 0], sizes = [2, 128], strides = [1, 1]} : vector<2x384xf32> to vector<2x128xf32>
    %307 = arith.addf %305, %306 : vector<2x128xf32>
    %308 = arith.negf %307 : vector<2x128xf32>
    %309 = math.exp %308 : vector<2x128xf32>
    %cst_68 = arith.constant 1.000000e+00 : f32
    %310 = vector.broadcast %cst_68 : f32 to vector<2x128xf32>
    %311 = arith.addf %310, %309 : vector<2x128xf32>
    %312 = arith.divf %310, %311 : vector<2x128xf32>
    %313 = vector.extract_strided_slice %303 {offsets = [0, 128], sizes = [2, 128], strides = [1, 1]} : vector<2x384xf32> to vector<2x128xf32>
    %314 = vector.extract_strided_slice %304 {offsets = [0, 128], sizes = [2, 128], strides = [1, 1]} : vector<2x384xf32> to vector<2x128xf32>
    %315 = arith.addf %313, %314 : vector<2x128xf32>
    %316 = arith.negf %315 : vector<2x128xf32>
    %317 = math.exp %316 : vector<2x128xf32>
    %cst_69 = arith.constant 1.000000e+00 : f32
    %318 = vector.broadcast %cst_69 : f32 to vector<2x128xf32>
    %319 = arith.addf %318, %317 : vector<2x128xf32>
    %320 = arith.divf %318, %319 : vector<2x128xf32>
    %321 = vector.extract_strided_slice %303 {offsets = [0, 256], sizes = [2, 128], strides = [1, 1]} : vector<2x384xf32> to vector<2x128xf32>
    %322 = vector.extract_strided_slice %304 {offsets = [0, 256], sizes = [2, 128], strides = [1, 1]} : vector<2x384xf32> to vector<2x128xf32>
    %323 = arith.addf %322, %5 : vector<2x128xf32>
    %324 = arith.mulf %312, %323 : vector<2x128xf32>
    %325 = arith.addf %321, %324 : vector<2x128xf32>
    %326 = math.tanh %325 : vector<2x128xf32>
    %cst_70 = arith.constant 1.000000e+00 : f32
    %327 = vector.broadcast %cst_70 : f32 to vector<2x128xf32>
    %328 = arith.subf %327, %320 : vector<2x128xf32>
    %329 = arith.mulf %328, %326 : vector<2x128xf32>
    %330 = arith.mulf %320, %290 : vector<2x128xf32>
    %331 = arith.addf %329, %330 : vector<2x128xf32>
    %332 = arith.mulf %331, %8 : vector<2x128xf32>
    %cst_71 = arith.constant dense<0.000000e+00> : vector<2xf32>
    %333 = vector.multi_reduction <add>, %332, %cst_71 [1] : vector<2x128xf32> to vector<2xf32>
    %334 = vector.shape_cast %333 : vector<2xf32> to vector<2x1xf32>
    %335 = vector.broadcast %9 : f32 to vector<2x1xf32>
    %336 = arith.addf %334, %335 : vector<2x1xf32>
    %337 = vector.broadcast %c7_i32 : i32 to vector<2x128xi32>
    %338 = arith.cmpi eq, %10, %337 : vector<2x128xi32>
    %339 = vector.shape_cast %336 : vector<2x1xf32> to vector<2x1xf32>
    %340 = vector.broadcast %339 : vector<2x1xf32> to vector<2x128xf32>
    %341 = arith.select %338, %340, %300 : vector<2x128xi1>, vector<2x128xf32>
    %c8_i32_72 = arith.constant 8 : i32
    %c0_73 = arith.constant 0 : index
    %c0_74 = arith.constant 0 : index
    %342 = vector.load %arg8[%c0_73, %c0_74] : memref<2x128xf32, #tpu.memory_space<vmem>>, vector<2x128xf32>
    tpu.vector_store %arg8[%c0_73, %c0_74], %341 {strides = array<i32>} : memref<2x128xf32, #tpu.memory_space<vmem>>, vector<2x128xf32>,
    %c0_75 = arith.constant 0 : index
    %c0_76 = arith.constant 0 : index
    %343 = vector.load %arg9[%c0_75, %c0_76] : memref<2x128xf32, #tpu.memory_space<vmem>>, vector<2x128xf32>
    tpu.vector_store %arg9[%c0_75, %c0_76], %331 {strides = array<i32>} : memref<2x128xf32, #tpu.memory_space<vmem>>, vector<2x128xf32>,
    return
  }
}

</mosaic_0001>

<bundles_post_ra>
// kernel: tpu_custom_call.1
= control target key start
LH: loop header
LB: loop body
LE: loop exit
PB: predicated region body
PF: predicated region fallthrough
CT: control target
= control target key end

     0   :  { %16 = vsyncpa [#allocation5], 0  ;;  %s3546_s0 = inlined_call_operand.vmem [shape: f32[8,2,4], index: 0, kind: input, shape index: {}]   ;;  %s3547_s1 = inlined_call_operand.vmem [shape: f32[2,128], index: 1, kind: input, shape index: {}]   ;;  %s3548_s2 = inlined_call_operand.vmem [shape: f32[4,384], index: 2, kind: input, shape index: {}]   ;;  %s3549_s3 = inlined_call_operand.hbm [shape: f32[128,384], index: 3, kind: input, shape index: {}]   ;;  %s3550_s4 = inlined_call_operand.vmem [shape: f32[1,384], index: 4, kind: input, shape index: {}]   ;;  %s3551_s5 = inlined_call_operand.vmem [shape: f32[1,128], index: 5, kind: input, shape index: {}]   ;;  %s3552_s6 = inlined_call_operand.vmem [shape: f32[1,128], index: 6, kind: input, shape index: {}]   ;;  %s3553_s7 = inlined_call_operand.<no memory space> [shape: f32[1,1], index: 7, kind: input, shape index: {}]   ;;  %s3554_s8 = inlined_call_operand.hbm [shape: f32[2,128], index: 8, kind: output, shape index: {0}]   ;;  %s3555_s9 = inlined_call_operand.hbm [shape: f32[2,128], index: 9, kind: output, shape index: {1}]  }
   0x1   :  { %17 = vsyncpa [#allocation6], 0 }
   0x2   :  { %18 = vsyncpa [#allocation9], 0  ;;  %s2854_s30 = smov [#allocation4]   ;;  %s2774_s13 = scalar_lea.hbm %s3549_s3, 6144 }
   0x3   :  { %s30_s10 = sshll.u32 %s2854_s30, 4  ;;  %p2775_p0 = scmp.ne.s32.totalorder %s3549_s3, %s2774_s13  ;;  %s31_s10 = int_to_ptr.vmem [resolvable:$true] %s30_s10 }
   0x4   :  { %p2778_p1 = scmp.lt.u32.totalorder %s2774_s13, %s3549_s3 }
   0x6   :  { %p2780_p2 = pnand %p2778_p1, %p2775_p0 }
   0x8   :  { %2783 = shalt.err (!%p2780_p2)
}
   0x9   :  { %s2784_s18 = scalar_lea.vmem %s31_s10, 6144  ;;  %p2789_p4 = scmp.lt.s32.totalorder %s31_s10, %s31_s10 }
   0xa   :  { %p2785_p3 = scmp.ne.s32.totalorder %s31_s10, %s2784_s18  ;;  %p2790_p5 = scmp.lt.s32.totalorder %s2784_s18, %s2784_s18 }
   0xc   :  { %p2791_p6 = por %p2790_p5, %p2789_p4 }
   0xe   :  { %p2792_p7 = pnand %p2791_p6, %p2785_p3 }
  0x10   :  { %2795 = shalt.err (!%p2792_p7)
}
  0x11   :  { %s2855_s19 = smov 384   ;;  %s2856_s20 = smov 24  }
  0x12   :  { %36 = dma.hbm_to_vmem [thread:$0]  %s3549_s3, 6144, %s31_s10, [#allocation5], %s2855_s19, %s2855_s19, %s2856_s20  }
  0x13   :  { %2844 = dma.done.wait [#allocation5], 6144  }
  0x14   :  { %2845 = vsyncadd [#allocation5], 4294961152  ;;  %v3560_v0 = vlaneseq  ;;  %v2933_v2 = vld [vmem:[%s3548_s2] sm:$0xff]  ;;  %v2938_v3 = vld [vmem:[%s3548_s2 + $0x8] sm:$0xf]  ;;  %s3049_s10 = smov 0  }
  0x15   :  { %3562 = vst [vmem:[#allocation14_spill] sm:$0xff] %v2933_v2  ;;  %3563 = vst [vmem:[#allocation15_spill] sm:$0xff] %v2938_v3  ;;  %v2940_v4 = vld [vmem:[#allocation4] sm:$0xff]  ;;  %v2942_v5 = vld [vmem:[#allocation4 + $0x8] sm:$0xff] }
  0x16   :  { %v2928_v1 = vand.u32 127, %v3560_v0  ;;  %v2944_v6 = vld [vmem:[#allocation4 + $0x10] sm:$0xff]  ;;  %v2946_v7 = vld [vmem:[#allocation4 + $0x18] sm:$0xff]  ;;  %v2948_v8 = vld [vmem:[#allocation4 + $0x20] sm:$0xff] }
  0x17   :  { %v2950_v9 = vld [vmem:[#allocation4 + $0x28] sm:$0xff]  ;;  %v2952_v10 = vld [vmem:[#allocation4 + $0x30] sm:$0xff]  ;;  %v2954_v11 = vld [vmem:[#allocation4 + $0x38] sm:$0xff] }
  0x18   :  { %3561 = vst [vmem:[#allocation13_spill] sm:$0xff] %v2928_v1  ;;  %v2956_v12 = vld [vmem:[#allocation4 + $0x40] sm:$0xff]  ;;  %v2958_v13 = vld [vmem:[#allocation4 + $0x48] sm:$0xff]  ;;  %v2960_v14 = vld [vmem:[#allocation4 + $0x50] sm:$0xff] }
  0x19   :  { %v2962_v15 = vld [vmem:[#allocation4 + $0x58] sm:$0xff]  ;;  %v2964_v16 = vld [vmem:[#allocation4 + $0x60] sm:$0xff]  ;;  %v2966_v17 = vld [vmem:[#allocation4 + $0x68] sm:$0xff] }
  0x1a   :  { %v2968_v18 = vld [vmem:[#allocation4 + $0x70] sm:$0xff]  ;;  %v2970_v19 = vld [vmem:[#allocation4 + $0x78] sm:$0xff]  ;;  %v2972_v20 = vld [vmem:[#allocation4 + $0x80] sm:$0xff] }
  0x1b   :  { %v2974_v21 = vld [vmem:[#allocation4 + $0x88] sm:$0xff]  ;;  %v2976_v22 = vld [vmem:[#allocation4 + $0x90] sm:$0xff]  ;;  %v2978_v23 = vld [vmem:[#allocation4 + $0x98] sm:$0xff] }
  0x1c   :  { %v2980_v24 = vld [vmem:[#allocation4 + $0xa0] sm:$0xff]  ;;  %v2982_v25 = vld [vmem:[#allocation4 + $0xa8] sm:$0xff]  ;;  %v2984_v26 = vld [vmem:[#allocation4 + $0xb0] sm:$0xff] }
  0x1d   :  { %v2986_v27 = vld [vmem:[#allocation4 + $0xb8] sm:$0xff]  ;;  %v2988_v28 = vld [vmem:[#allocation4 + $0xc0] sm:$0xff]  ;;  %v2990_v29 = vld [vmem:[#allocation4 + $0xc8] sm:$0xff] }
  0x1e   :  { %v2992_v30 = vld [vmem:[#allocation4 + $0xd0] sm:$0xff]  ;;  %v2994_v31 = vld [vmem:[#allocation4 + $0xd8] sm:$0xff]  ;;  %v2996_v32 = vld [vmem:[#allocation4 + $0xe0] sm:$0xff] }
  0x1f   :  { %v2998_v33 = vld [vmem:[#allocation4 + $0xe8] sm:$0xff]  ;;  %v3000_v34 = vld [vmem:[#allocation4 + $0xf0] sm:$0xff]  ;;  %v3002_v35 = vld [vmem:[#allocation4 + $0xf8] sm:$0xff] }
  0x20   :  { %v3004_v36 = vld [vmem:[#allocation4 + $0x100] sm:$0xff]  ;;  %v3006_v37 = vld [vmem:[#allocation4 + $0x108] sm:$0xff]  ;;  %v3008_v38 = vld [vmem:[#allocation4 + $0x110] sm:$0xff] }
  0x21   :  { %v3010_v39 = vld [vmem:[#allocation4 + $0x118] sm:$0xff]  ;;  %v3012_v40 = vld [vmem:[#allocation4 + $0x120] sm:$0xff]  ;;  %v3014_v41 = vld [vmem:[#allocation4 + $0x128] sm:$0xff] }
  0x22   :  { %v3016_v42 = vld [vmem:[#allocation4 + $0x130] sm:$0xff]  ;;  %v3018_v43 = vld [vmem:[#allocation4 + $0x138] sm:$0xff]  ;;  %v3020_v44 = vld [vmem:[#allocation4 + $0x140] sm:$0xff] }
  0x23   :  { %3564 = vst [vmem:[#allocation16_spill] sm:$0xff] %v3016_v42  ;;  %v3022_v45 = vld [vmem:[#allocation4 + $0x148] sm:$0xff]  ;;  %v3024_v46 = vld [vmem:[#allocation4 + $0x150] sm:$0xff]  ;;  %v3026_v47 = vld [vmem:[#allocation4 + $0x158] sm:$0xff] }
  0x24   :  { %3565 = vst [vmem:[#allocation17_spill] sm:$0xff] %v3022_v45  ;;  %3566 = vst [vmem:[#allocation18_spill] sm:$0xff] %v3024_v46  ;;  %v3028_v48 = vld [vmem:[#allocation4 + $0x160] sm:$0xff]  ;;  %v3030_v49 = vld [vmem:[#allocation4 + $0x168] sm:$0xff] }
  0x25   :  { %3567 = vst [vmem:[#allocation19_spill] sm:$0xff] %v3028_v48  ;;  %3568 = vst [vmem:[#allocation20_spill] sm:$0xff] %v3030_v49  ;;  %v3032_v50 = vld [vmem:[#allocation4 + $0x170] sm:$0xff]  ;;  %v3034_v51 = vld [vmem:[#allocation4 + $0x178] sm:$0xff] }
  0x26   :  { %3569 = vst [vmem:[#allocation21_spill] sm:$0xff] %v3034_v51  ;;  %v98_v52 = vld [vmem:[%s3550_s4] sm:$0x7] }
  0x27   :  { %v3042_v53 = vld [vmem:[%s3551_s5] ss:$0 sm:$0xff] }
  0x28   :  { %3570 = vst [vmem:[#allocation22_spill] sm:$0xff] %v3042_v53  ;;  %v3047_v54 = vld [vmem:[%s3552_s6] ss:$0 sm:$0xff] }
  0x29   :  { %3571 = vst [vmem:[#allocation23_spill] sm:$0xff] %v3047_v54 }
  0x2a LB: > { %v3572_v2 = vld [vmem:[#allocation14_spill] sm:$0xff]  ;;  %vm148_vm0 = vcmask 1043456   ;;  %v2857_v56 = vmov 0.0   ;;  %s1780_s4 = sshll.u32 %s2852_s10, 1  ;;  %vm144_vm1 = vcmask 31744   ;;  %v3573_v3 = vld [vmem:[#allocation15_spill] sm:$0xff]  ;;  %v3574_v0 = vlaneseq  ;;  %s2852_s10 = sphi %s3049_s10, %s121_s10  }
  0x2b   : > { %v143_v55 = vcombine.high %v3572_v2, %v3572_v2  ;;  %219 = vmatprep.mubr.f32.mxu0 %v2857_v56  ;;  %1942 = vmatprep.subr.mxu1 %v2857_v56  ;;  %s123_s11 = scalar_lea.vmem %s3546_s0, %s1780_s4  ;;  %vm2858_vm2 = vmmov 0   ;;  %v2859_v59 = vmov 1983009808   ;;  %s1803_s12 = smul.u32 6, %s2852_s10 }
  0x2c   : > { %1943 = vmatpush3.msk.msra.mxu1 %vm148_vm0, %v3573_v3  ;;  %1944 = vmatprep.mubr.msk.f32.mxu1 %vm2858_vm2, %v2857_v56  ;;  %v124_v57 = vld [vmem:[%s123_s11] sm:$0x3]  ;;  %v127_v58 = vshrl.u32 %v3574_v0, 7  ;;  %v301_v60 = vunpack.c.l.s4 %v2859_v59  ;;  %s121_s10 = sadd.s32 1, %s2852_s10  }
  0x2d   : > { %1781 = vmatprep.subr.msk.mxu0 %vm148_vm0, %v143_v55  ;;  %1945 = vmatmul.mubr.msk.f32.vlgmr.msra.gmra.mrb[0].mxu1 %vm144_vm1, %v124_v57  ;;  %s318_s13 = scalar_lea.vmem [#allocation2], %s1803_s12  ;;  %p118_p8 = scmp.ge.s32.totalorder %s121_s10, 8  }
  0x2e   : > { %1782 = vmatpush1.msk.msra.mxu0 %vm148_vm0, %v3572_v2  ;;  %v128_v61 = vsub.s32 0, %v127_v58  ;;  %v136_v62 = vsub.s32 2, %v127_v58  ;;  %v132_v63 = vsub.s32 1, %v127_v58  ;;  %v302_v55 = vunpack.c.0.s8 %v301_v60 }
  0x2f   : > { %1783 = vmatmul.mubr.msk.f32.vlgmr.msra.gmra.mrb[0].mxu0 %vm144_vm1, %v124_v57  ;;  %vm2862_vm3 = vmmov (%p118_p8), 0   ;;  %vm491_vm4 = vcmask (%p118_p8), 1041408  }
  0x30   : > { %v129_v3 = vrot.slane %v98_v52, %v128_v61  ;;  %v137_v2 = vrot.slane %v98_v52, %v136_v62  ;;  %v133_v1 = vrot.slane %v98_v52, %v132_v63  ;;  %v305_v53 = vsub.s32 %v302_v55, %v127_v58  ;;  %v3582_v63 = vld [vmem:[#allocation23_spill] sm:$0xff] (%p118_p8) }
 0x100   : > { %v292_v51 = vpop.f32.mrb[0].mxu1 }
 0x101   : > { %v293_v49 = vadd.f32 %v292_v51, %v137_v2  ;;  %v1946_v46 = vpop.f32.mrb[1].mxu1  ;;  %v3083_v2 = vpack.c.bf16 (%p118_p8), %v2958_v13, %v2952_v10  ;;  %v2861_v10 = vmov (%p118_p8), 0.0   ;;  %v3128_v13 = vpack.c.bf16 (%p118_p8), %v2996_v32, %v2990_v29  ;;  %v3579_v29 = vld [vmem:[#allocation19_spill] sm:$0xff] (%p118_p8)  ;;  %v3200_v32 = vld [vmem:[%s3547_s1] sm:$0x3] (%p118_p8)  ;;  %s2863_s1 = smov (%p118_p8), [#allocation8]  }
 0x102   : > { %v221_v54 = vpop.f32.mrb[0].mxu0  ;;  %386 = vmatprep.mubr.f32.mxu0 (%p118_p8), %v2861_v10  ;;  %1979 = vmatprep.mubr.msk.f32.mxu1 (%p118_p8), %vm2862_vm3, %v2861_v10  ;;  %s1756_s15 = sshll.u32 (%p118_p8), %s2863_s1, 4  ;;  %s1757_s15 = int_to_ptr.vmem [resolvable:$true] %s1756_s15 }
 0x103   : > { %v222_v48 = vadd.f32 %v221_v54, %v129_v3  ;;  %v223_v56 = vpop.f32.mrb[1].mxu0  ;;  %v313_v45 = vrot.slane %v293_v49, %v305_v53  ;;  %v3069_v3 = vpack.c.bf16 (%p118_p8), %v2948_v8, %v2942_v5  ;;  %v3087_v5 = vpack.c.bf16 (%p118_p8), %v2950_v9, %v2944_v6  ;;  %s2796_s16 = scalar_lea.vmem (%p118_p8), %s1757_s15, 32  ;;  %p2801_p10 = scmp.lt.s32.totalorder (%p118_p8), %s1757_s15, %s1757_s15 }
 0x104   : > { %v224_v57 = vadd.f32 %v223_v56, %v133_v1  ;;  %v3073_v1 = vpack.c.bf16 (%p118_p8), %v2946_v7, %v2940_v4  ;;  %v3092_v4 = vpack.c.bf16 (%p118_p8), %v2972_v20, %v2966_v17  ;;  %v2860_v7 = vmov (%p118_p8), 0.0|0.0   ;;  %p2797_p9 = scmp.ne.s32.totalorder (%p118_p8), %s1757_s15, %s2796_s16  ;;  %p2802_p11 = scmp.lt.s32.totalorder (%p118_p8), %s2796_s16, %s2796_s16 }
 0x105   :  { %2228 = vmatprep.subr.bf16.mxu0 (%p118_p8), %v3069_v3  ;;  %2259 = vmatprep.subr.bf16.mxu1 (%p118_p8), %v2860_v7  ;;  %v3098_v8 = vpack.c.bf16 (%p118_p8), %v2962_v15, %v2956_v12  ;;  %v3107_v6 = vpack.c.bf16 (%p118_p8), %v2970_v19, %v2964_v16  ;;  %v3112_v9 = vpack.c.bf16 (%p118_p8), %v2984_v26, %v2978_v23  ;;  %v3575_v23 = vld [vmem:[#allocation16_spill] sm:$0xff] (%p118_p8)  ;;  %v3577_v26 = vld [vmem:[#allocation18_spill] sm:$0xff] (%p118_p8) }
 0x106   : > { %v299_v0 = vcombine.low %v222_v48, %v224_v57  ;;  %120 = sbr.rel (!%p118_p8) target bundleno = 42 (0x2a), region = 80  ;;  %2230 = vmatpush1.bf16.msra.mxu0 (%p118_p8), %v3073_v1  ;;  %2261 = vmatpush3.bf16.msra.mxu1 (%p118_p8), %v3087_v5  ;;  %v3123_v12 = vpack.c.bf16 (%p118_p8), %v2982_v25, %v2976_v22  ;;  %v3139_v15 = vpack.c.bf16 (%p118_p8), %v2994_v31, %v2988_v28  ;;  %p2803_p12 = por (%p118_p8), %p2802_p11, %p2801_p10 }
 0x107   :  { %2262 = vmatprep.subr.bf16.mxu1 (%p118_p8), %v2860_v7  ;;  %v3144_v16 = vpack.c.bf16 (%p118_p8), %v3008_v38, %v3002_v35  ;;  %v3149_v17 = vpack.c.bf16 (%p118_p8), %v2998_v33, %v2992_v30  ;;  %v3160_v19 = vpack.c.bf16 (%p118_p8), %v3020_v44, %v3014_v41  ;;  %v3165_v20 = vpack.c.bf16 (%p118_p8), %v3010_v39, %v3004_v36  ;;  %v3580_v30 = vld [vmem:[#allocation21_spill] sm:$0xff] (%p118_p8) }
 0x108   : > { %v306_v59 = vrot.slane %v299_v0, %v305_v53  ;;  %v3077_v0 = vpack.c.bf16 (%p118_p8), %v2960_v14, %v2954_v11  ;;  %v3117_v11 = vpack.c.bf16 (%p118_p8), %v2974_v21, %v2968_v18  ;;  %v3133_v14 = vpack.c.bf16 (%p118_p8), %v2986_v27, %v2980_v24  ;;  %v3576_v24 = vld [vmem:[#allocation17_spill] sm:$0xff] (%p118_p8)  ;;  %v3578_v27 = vld [vmem:[#allocation20_spill] sm:$0xff] (%p118_p8)  ;;  %p2804_p13 = pnand (%p118_p8), %p2803_p12, %p2797_p9 }
 0x109   :  { %v3155_v18 = vpack.c.bf16 (%p118_p8), %v3006_v37, %v3000_v34  ;;  %v3171_v21 = vpack.c.bf16 (%p118_p8), %v3018_v43, %v3012_v40  ;;  %v3176_v22 = vpack.c.bf16 (%p118_p8), %v3032_v50, %v3026_v47  ;;  %v3181_v25 = vpack.c.bf16 (%p118_p8), %v3576_v24, %v3575_v23  ;;  %v3581_v47 = vld [vmem:[#allocation22_spill] sm:$0xff] (%p118_p8) }
 0x10a   : > { %v314_v42 = vcombine.low %v306_v59, %v313_v45  ;;  %2232 = vmatprep.subr.bf16.mxu0 (%p118_p8), %v3077_v0  ;;  %2264 = vmatpush3.bf16.msra.mxu1 (%p118_p8), %v3098_v8  ;;  %v3187_v28 = vpack.c.bf16 (%p118_p8), %v3578_v27, %v3577_v26  ;;  %v3193_v31 = vpack.c.bf16 (%p118_p8), %v3580_v30, %v3579_v29 }
 0x10b   :  { %2234 = vmatpush1.bf16.msra.mxu0 (%p118_p8), %v3083_v2  ;;  %2265 = vmatprep.subr.bf16.mxu1 (%p118_p8), %v2860_v7 }
 0x10c   : > { %319 = vst [vmem:[%s318_s13] sm:$0x3f] %v314_v42  ;;  %2236 = vmatprep.subr.bf16.mxu0 (%p118_p8), %v3092_v4 }
 0x10e   :  { %2267 = vmatpush3.bf16.msra.mxu1 %v3117_v11 }
 0x10f   :  { %2238 = vmatpush1.bf16.msra.mxu0 %v3107_v6  ;;  %2268 = vmatprep.subr.bf16.mxu1 %v2860_v7 }
 0x110   :  { %2240 = vmatprep.subr.bf16.mxu0 %v3112_v9 }
 0x112   :  { %2270 = vmatpush3.bf16.msra.mxu1 %v3133_v14 }
 0x113   :  { %2242 = vmatpush1.bf16.msra.mxu0 %v3123_v12  ;;  %2271 = vmatprep.subr.bf16.mxu1 %v2860_v7  ;;  %v321_v33 = vld [vmem:[#allocation2] sm:$0x3f]  ;;  %v500_v57 = vld [vmem:[#allocation2 + $0x6] sm:$0x3f] }
 0x114   :  { %2244 = vmatprep.subr.bf16.mxu0 %v3128_v13  ;;  %v471_v35 = vrot.slane %v321_v33, 2  ;;  %v482_v49 = vrot.slane %v321_v33, 4  ;;  %v650_v24 = vrot.slane %v500_v57, 2 }
 0x116   :  { %2273 = vmatpush3.bf16.msra.mxu1 %v3149_v17 }
 0x117   :  { %2246 = vmatpush1.bf16.msra.mxu0 %v3139_v15  ;;  %2274 = vmatprep.subr.bf16.mxu1 %v2860_v7 }
 0x118   :  { %2248 = vmatprep.subr.bf16.mxu0 %v3144_v16 }
 0x11a   :  { %2276 = vmatpush3.bf16.msra.mxu1 %v3165_v20 }
 0x11b   :  { %2250 = vmatpush1.bf16.msra.mxu0 %v3155_v18  ;;  %2277 = vmatprep.subr.bf16.mxu1 %v2860_v7 }
 0x11c   :  { %2252 = vmatprep.subr.bf16.mxu0 %v3160_v19 }
 0x11e   :  { %2279 = vmatpush3.bf16.msra.mxu1 %v3181_v25 }
 0x11f   :  { %2254 = vmatpush1.bf16.msra.mxu0 %v3171_v21  ;;  %2280 = vmatprep.subr.bf16.mxu1 %v2860_v7 }
 0x120   :  { %2256 = vmatprep.subr.bf16.mxu0 %v3176_v22 }
 0x122   :  { %2282 = vmatpush3.bf16.msra.mxu1 %v3193_v31 }
 0x123   :  { %2258 = vmatpush1.bf16.msra.mxu0 %v3187_v28  ;;  %2315 = vmatprep.subr.bf16.mxu1 %v2860_v7 }
 0x124   :  { %2284 = vmatprep.subr.bf16.mxu0 %v3069_v3 }
 0x125   :  { %1980 = vmatmul.mubr.f32.vlgmr.msra.gmra.mrb[0].mxu1 %v3200_v32 }
 0x126   :  { %387 = vmatmul.mubr.f32.vlgmr.msra.gmra.mrb[0].mxu0 %v3200_v32  ;;  %2317 = vmatpush3.bf16.msra.mxu1 %v3087_v5 }
 0x127   :  { %2286 = vmatpush1.bf16.msra.mxu0 %v3073_v1  ;;  %565 = vmatprep.mubr.f32.mxu0 %v2861_v10 }
 0x128   :  { %2288 = vmatprep.subr.bf16.mxu0 %v3077_v0  ;;  %2014 = vmatprep.mubr.msk.f32.mxu1 %vm2862_vm3, %v2861_v10 }
 0x129   :  { %2318 = vmatprep.subr.bf16.mxu1 %v2860_v7 }
 0x12a   :  { %2320 = vmatpush3.bf16.msra.mxu1 %v3098_v8 }
 0x12b   :  { %2290 = vmatpush1.bf16.msra.mxu0 %v3083_v2  ;;  %2321 = vmatprep.subr.bf16.mxu1 %v2860_v7 }
 0x12c   :  { %2292 = vmatprep.subr.bf16.mxu0 %v3092_v4 }
 0x12e   :  { %2323 = vmatpush3.bf16.msra.mxu1 %v3117_v11 }
 0x12f   :  { %2294 = vmatpush1.bf16.msra.mxu0 %v3107_v6  ;;  %2324 = vmatprep.subr.bf16.mxu1 %v2860_v7 }
 0x130   :  { %2296 = vmatprep.subr.bf16.mxu0 %v3112_v9 }
 0x132   :  { %2326 = vmatpush3.bf16.msra.mxu1 %v3133_v14 }
 0x133   :  { %2298 = vmatpush1.bf16.msra.mxu0 %v3123_v12  ;;  %2327 = vmatprep.subr.bf16.mxu1 %v2860_v7 }
 0x134   :  { %2300 = vmatprep.subr.bf16.mxu0 %v3128_v13 }
 0x136   :  { %2329 = vmatpush3.bf16.msra.mxu1 %v3149_v17 }
 0x137   :  { %2302 = vmatpush1.bf16.msra.mxu0 %v3139_v15  ;;  %2330 = vmatprep.subr.bf16.mxu1 %v2860_v7 }
 0x138   :  { %2304 = vmatprep.subr.bf16.mxu0 %v3144_v16 }
 0x13a   :  { %2332 = vmatpush3.bf16.msra.mxu1 %v3165_v20 }
 0x13b   :  { %2306 = vmatpush1.bf16.msra.mxu0 %v3155_v18  ;;  %2333 = vmatprep.subr.bf16.mxu1 %v2860_v7 }
 0x13c   :  { %2308 = vmatprep.subr.bf16.mxu0 %v3160_v19 }
 0x13e   :  { %2335 = vmatpush3.bf16.msra.mxu1 %v3181_v25 }
 0x13f   :  { %2310 = vmatpush1.bf16.msra.mxu0 %v3171_v21  ;;  %2336 = vmatprep.subr.bf16.mxu1 %v2860_v7 }
 0x140   :  { %2312 = vmatprep.subr.bf16.mxu0 %v3176_v22 }
 0x142   :  { %2338 = vmatpush3.bf16.msra.mxu1 %v3193_v31 }
 0x143   :  { %2314 = vmatpush1.bf16.msra.mxu0 %v3187_v28  ;;  %2371 = vmatprep.subr.bf16.mxu1 %v2860_v7 }
 0x144   :  { %2340 = vmatprep.subr.bf16.mxu0 %v3069_v3 }
 0x1f8   :  { %v459_v38 = vpop.f32.mrb[0].mxu1 }
 0x1f9   :  { %v388_v34 = vpop.f32.mrb[0].mxu0  ;;  %v1981_v40 = vpop.f32.mrb[1].mxu1  ;;  %v480_v48 = vadd.f32 %v3581_v47, %v459_v38  ;;  %v661_v38 = vrot.slane %v500_v57, 4 }
 0x1fa   :  { %v463_v36 = vadd.f32 %v388_v34, %v321_v33  ;;  %v390_v37 = vpop.f32.mrb[1].mxu0 }
 0x1fb   :  { %v473_v41 = vadd.f32 %v471_v35, %v390_v37 }
 0x1fc   :  { %v1787_v39 = vmul.f32 -1.442695, %v463_v36 }
 0x1fd   :  { %v1788_v42 = vmul.f32 -1.442695, %v473_v41 }
 0x1fe   :  { %2694 = vpow2.f32 %v1787_v39 }
 0x1ff   :  { %2696 = vpow2.f32 %v1788_v42 }
 0x208   :  { %v2695_v43 = vpop.eup %2694 }
 0x209   :  { %v467_v44 = vadd.f32 1.0, %v2695_v43  ;;  %v2697_v45 = vpop.eup %2696 }
 0x20a   :  { %v477_v46 = vadd.f32 1.0, %v2697_v45 }
 0x20b   :  { %2698 = vrcp.f32 %v467_v44 }
 0x20c   :  { %2700 = vrcp.f32 %v477_v46 }
 0x215   :  { %v2699_v50 = vpop.eup %2698 }
 0x216   :  { %v481_v51 = vmul.f32 %v2699_v50, %v480_v48  ;;  %v2701_v53 = vpop.eup %2700 }
 0x217   :  { %v486_v54 = vsub.f32 1.0, %v2701_v53  ;;  %v488_v61 = vmul.f32 %v2701_v53, %v3200_v32 }
 0x218   :  { %v484_v52 = vadd.f32 %v482_v49, %v481_v51 }
 0x21a   :  { %2702 = vtanh.f32 %v484_v52  ;;  %v677_v52 = vld [vmem:[#allocation2 + $0xc] sm:$0x3f] }
 0x224   :  { %v2703_v58 = vpop.eup %2702 }
 0x225   :  { %v487_v60 = vmul.f32 %v2703_v58, %v486_v54  ;;  %v827_v58 = vrot.slane %v677_v52, 2 }
 0x227   :  { %v3244_v62 = vadd.f32 %v488_v61, %v487_v60 }
 0x229   :  { %566 = vmatmul.mubr.f32.vlgmr.msra.gmra.mrb[2].mxu0 %v3244_v62  ;;  %2015 = vmatmul.mubr.f32.vlgmr.msra.gmra.mrb[2].mxu1 %v3244_v62  ;;  %v490_v55 = vmul.f32 %v3582_v63, %v3244_v62 }
 0x22a   :  { %2342 = vmatpush1.bf16.msra.mxu0 %v3073_v1  ;;  %2373 = vmatpush3.bf16.msra.mxu1 %v3087_v5 }
 0x22b   :  { %v492_v56 = vsel %vm491_vm4, %v490_v55, 0.0  ;;  %2344 = vmatprep.subr.bf16.mxu0 %v3077_v0  ;;  %2374 = vmatprep.subr.bf16.mxu1 %v2860_v7 }
 0x22c   :  { %493 = vadd.xlane.f32.xlu0 %v492_v56  ;;  %742 = vmatprep.mubr.f32.mxu0 %v2861_v10 }
 0x22d   :  { %2049 = vmatprep.mubr.msk.f32.mxu1 %vm2862_vm3, %v2861_v10 }
 0x22e   :  { %2346 = vmatpush1.bf16.msra.mxu0 %v3083_v2  ;;  %2376 = vmatpush3.bf16.msra.mxu1 %v3098_v8 }
 0x22f   :  { %2348 = vmatprep.subr.bf16.mxu0 %v3092_v4  ;;  %2377 = vmatprep.subr.bf16.mxu1 %v2860_v7 }
 0x232   :  { %2350 = vmatpush1.bf16.msra.mxu0 %v3107_v6  ;;  %2379 = vmatpush3.bf16.msra.mxu1 %v3117_v11 }
 0x233   :  { %2352 = vmatprep.subr.bf16.mxu0 %v3112_v9  ;;  %2380 = vmatprep.subr.bf16.mxu1 %v2860_v7 }
 0x236   :  { %2354 = vmatpush1.bf16.msra.mxu0 %v3123_v12  ;;  %2382 = vmatpush3.bf16.msra.mxu1 %v3133_v14 }
 0x237   :  { %2356 = vmatprep.subr.bf16.mxu0 %v3128_v13  ;;  %2383 = vmatprep.subr.bf16.mxu1 %v2860_v7 }
 0x23a   :  { %2358 = vmatpush1.bf16.msra.mxu0 %v3139_v15  ;;  %2385 = vmatpush3.bf16.msra.mxu1 %v3149_v17 }
 0x23b   :  { %2360 = vmatprep.subr.bf16.mxu0 %v3144_v16  ;;  %2386 = vmatprep.subr.bf16.mxu1 %v2860_v7 }
 0x23e   :  { %2362 = vmatpush1.bf16.msra.mxu0 %v3155_v18  ;;  %2388 = vmatpush3.bf16.msra.mxu1 %v3165_v20 }
 0x23f   :  { %2364 = vmatprep.subr.bf16.mxu0 %v3160_v19  ;;  %2389 = vmatprep.subr.bf16.mxu1 %v2860_v7 }
 0x242   :  { %2366 = vmatpush1.bf16.msra.mxu0 %v3171_v21  ;;  %2391 = vmatpush3.bf16.msra.mxu1 %v3181_v25 }
 0x243   :  { %2368 = vmatprep.subr.bf16.mxu0 %v3176_v22  ;;  %2392 = vmatprep.subr.bf16.mxu1 %v2860_v7 }
 0x246   :  { %2370 = vmatpush1.bf16.msra.mxu0 %v3187_v28  ;;  %2394 = vmatpush3.bf16.msra.mxu1 %v3193_v31 }
 0x247   :  { %2396 = vmatprep.subr.bf16.mxu0 %v3069_v3  ;;  %2427 = vmatprep.subr.bf16.mxu1 %v2860_v7 }
 0x2fc   :  { %v567_v59 = vpop.f32.mrb[2].mxu0  ;;  %v638_v23 = vpop.f32.mrb[2].mxu1 }
 0x2fd   :  { %v642_v26 = vadd.f32 %v567_v59, %v500_v57  ;;  %v569_v27 = vpop.f32.mrb[3].mxu0  ;;  %v2016_v29 = vpop.f32.mrb[3].mxu1  ;;  %v659_v39 = vadd.f32 %v3581_v47, %v638_v23 }
 0x2fe   :  { %v652_v32 = vadd.f32 %v650_v24, %v569_v27  ;;  %v838_v27 = vrot.slane %v677_v52, 4 }
 0x2ff   :  { %v1789_v30 = vmul.f32 -1.442695, %v642_v26 }
 0x300   :  { %v1790_v33 = vmul.f32 -1.442695, %v652_v32 }
 0x301   :  { %2704 = vpow2.f32 %v1789_v30 }
 0x302   :  { %2706 = vpow2.f32 %v1790_v33 }
 0x30b   :  { %v2705_v34 = vpop.eup %2704 }
 0x30c   :  { %v646_v35 = vadd.f32 1.0, %v2705_v34  ;;  %v2707_v36 = vpop.eup %2706 }
 0x30d   :  { %v656_v37 = vadd.f32 1.0, %v2707_v36 }
 0x30e   :  { %2708 = vrcp.f32 %v646_v35 }
 0x30f   :  { %2710 = vrcp.f32 %v656_v37 }
 0x318   :  { %v2709_v40 = vpop.eup %2708 }
 0x319   :  { %v660_v41 = vmul.f32 %v2709_v40, %v659_v39  ;;  %v2711_v43 = vpop.eup %2710 }
 0x31a   :  { %v665_v44 = vsub.f32 1.0, %v2711_v43  ;;  %v667_v48 = vmul.f32 %v2711_v43, %v3244_v62 }
 0x31b   :  { %v663_v42 = vadd.f32 %v661_v38, %v660_v41 }
 0x31d   :  { %2712 = vtanh.f32 %v663_v42  ;;  %v854_v42 = vld [vmem:[#allocation2 + $0x12] sm:$0x3f] }
 0x327   :  { %v2713_v45 = vpop.eup %2712 }
 0x328   :  { %v666_v46 = vmul.f32 %v2713_v45, %v665_v44  ;;  %v1004_v45 = vrot.slane %v854_v42, 2 }
 0x32a   :  { %v3288_v49 = vadd.f32 %v667_v48, %v666_v46 }
 0x32c   :  { %743 = vmatmul.mubr.f32.vlgmr.msra.gmra.mrb[4].mxu0 %v3288_v49  ;;  %2050 = vmatmul.mubr.f32.vlgmr.msra.gmra.mrb[4].mxu1 %v3288_v49  ;;  %v669_v50 = vmul.f32 %v3582_v63, %v3288_v49 }
 0x32d   :  { %2398 = vmatpush1.bf16.msra.mxu0 %v3073_v1  ;;  %2429 = vmatpush3.bf16.msra.mxu1 %v3087_v5 }
 0x32e   :  { %v670_v51 = vsel %vm491_vm4, %v669_v50, 0.0  ;;  %2400 = vmatprep.subr.bf16.mxu0 %v3077_v0  ;;  %2430 = vmatprep.subr.bf16.mxu1 %v2860_v7 }
 0x32f   :  { %671 = vadd.xlane.f32.xlu0 %v670_v51  ;;  %919 = vmatprep.mubr.f32.mxu0 %v2861_v10 }
 0x330   :  { %2084 = vmatprep.mubr.msk.f32.mxu1 %vm2862_vm3, %v2861_v10 }
 0x331   :  { %2402 = vmatpush1.bf16.msra.mxu0 %v3083_v2  ;;  %2432 = vmatpush3.bf16.msra.mxu1 %v3098_v8 }
 0x332   :  { %2404 = vmatprep.subr.bf16.mxu0 %v3092_v4  ;;  %2433 = vmatprep.subr.bf16.mxu1 %v2860_v7 }
 0x335   :  { %2406 = vmatpush1.bf16.msra.mxu0 %v3107_v6  ;;  %2435 = vmatpush3.bf16.msra.mxu1 %v3117_v11 }
 0x336   :  { %2408 = vmatprep.subr.bf16.mxu0 %v3112_v9  ;;  %2436 = vmatprep.subr.bf16.mxu1 %v2860_v7 }
 0x339   :  { %2410 = vmatpush1.bf16.msra.mxu0 %v3123_v12  ;;  %2438 = vmatpush3.bf16.msra.mxu1 %v3133_v14 }
 0x33a   :  { %2412 = vmatprep.subr.bf16.mxu0 %v3128_v13  ;;  %2439 = vmatprep.subr.bf16.mxu1 %v2860_v7 }
 0x33d   :  { %2414 = vmatpush1.bf16.msra.mxu0 %v3139_v15  ;;  %2441 = vmatpush3.bf16.msra.mxu1 %v3149_v17 }
 0x33e   :  { %2416 = vmatprep.subr.bf16.mxu0 %v3144_v16  ;;  %2442 = vmatprep.subr.bf16.mxu1 %v2860_v7 }
 0x341   :  { %2418 = vmatpush1.bf16.msra.mxu0 %v3155_v18  ;;  %2444 = vmatpush3.bf16.msra.mxu1 %v3165_v20 }
 0x342   :  { %2420 = vmatprep.subr.bf16.mxu0 %v3160_v19  ;;  %2445 = vmatprep.subr.bf16.mxu1 %v2860_v7 }
 0x345   :  { %2422 = vmatpush1.bf16.msra.mxu0 %v3171_v21  ;;  %2447 = vmatpush3.bf16.msra.mxu1 %v3181_v25 }
 0x346   :  { %2424 = vmatprep.subr.bf16.mxu0 %v3176_v22  ;;  %2448 = vmatprep.subr.bf16.mxu1 %v2860_v7 }
 0x349   :  { %2426 = vmatpush1.bf16.msra.mxu0 %v3187_v28  ;;  %2450 = vmatpush3.bf16.msra.mxu1 %v3193_v31 }
 0x34a   :  { %2452 = vmatprep.subr.bf16.mxu0 %v3069_v3  ;;  %2483 = vmatprep.subr.bf16.mxu1 %v2860_v7 }
 0x3ff   :  { %v744_v53 = vpop.f32.mrb[4].mxu0  ;;  %v815_v54 = vpop.f32.mrb[4].mxu1 }
 0x400   :  { %v819_v60 = vadd.f32 %v744_v53, %v677_v52  ;;  %v746_v61 = vpop.f32.mrb[5].mxu0  ;;  %v2051_v62 = vpop.f32.mrb[5].mxu1  ;;  %v836_v29 = vadd.f32 %v3581_v47, %v815_v54 }
 0x401   :  { %v829_v56 = vadd.f32 %v827_v58, %v746_v61  ;;  %v1015_v61 = vrot.slane %v854_v42, 4 }
 0x402   :  { %v1791_v55 = vmul.f32 -1.442695, %v819_v60 }
 0x403   :  { %v1792_v57 = vmul.f32 -1.442695, %v829_v56 }
 0x404   :  { %2714 = vpow2.f32 %v1791_v55 }
 0x405   :  { %2716 = vpow2.f32 %v1792_v57 }
 0x40e   :  { %v2715_v59 = vpop.eup %2714 }
 0x40f   :  { %v823_v23 = vadd.f32 1.0, %v2715_v59  ;;  %v2717_v24 = vpop.eup %2716 }
 0x410   :  { %v833_v26 = vadd.f32 1.0, %v2717_v24 }
 0x411   :  { %2718 = vrcp.f32 %v823_v23 }
 0x412   :  { %2720 = vrcp.f32 %v833_v26 }
 0x41b   :  { %v2719_v30 = vpop.eup %2718 }
 0x41c   :  { %v837_v32 = vmul.f32 %v2719_v30, %v836_v29  ;;  %v2721_v34 = vpop.eup %2720 }
 0x41d   :  { %v842_v35 = vsub.f32 1.0, %v2721_v34  ;;  %v844_v38 = vmul.f32 %v2721_v34, %v3288_v49 }
 0x41e   :  { %v840_v33 = vadd.f32 %v838_v27, %v837_v32 }
 0x420   :  { %2722 = vtanh.f32 %v840_v33  ;;  %v1031_v33 = vld [vmem:[#allocation2 + $0x18] sm:$0x3f] }
 0x42a   :  { %v2723_v36 = vpop.eup %2722 }
 0x42b   :  { %v843_v37 = vmul.f32 %v2723_v36, %v842_v35  ;;  %v1181_v36 = vrot.slane %v1031_v33, 2 }
 0x42d   :  { %v3332_v39 = vadd.f32 %v844_v38, %v843_v37 }
 0x42f   :  { %920 = vmatmul.mubr.f32.vlgmr.msra.gmra.mrb[6].mxu0 %v3332_v39  ;;  %2085 = vmatmul.mubr.f32.vlgmr.msra.gmra.mrb[6].mxu1 %v3332_v39  ;;  %v846_v40 = vmul.f32 %v3582_v63, %v3332_v39 }
 0x430   :  { %2454 = vmatpush1.bf16.msra.mxu0 %v3073_v1  ;;  %2485 = vmatpush3.bf16.msra.mxu1 %v3087_v5 }
 0x431   :  { %v847_v41 = vsel %vm491_vm4, %v846_v40, 0.0  ;;  %2456 = vmatprep.subr.bf16.mxu0 %v3077_v0  ;;  %2486 = vmatprep.subr.bf16.mxu1 %v2860_v7 }
 0x432   :  { %848 = vadd.xlane.f32.xlu1 %v847_v41  ;;  %1096 = vmatprep.mubr.f32.mxu0 %v2861_v10 }
 0x433   :  { %2119 = vmatprep.mubr.msk.f32.mxu1 %vm2862_vm3, %v2861_v10 }
 0x434   :  { %2458 = vmatpush1.bf16.msra.mxu0 %v3083_v2  ;;  %2488 = vmatpush3.bf16.msra.mxu1 %v3098_v8 }
 0x435   :  { %2460 = vmatprep.subr.bf16.mxu0 %v3092_v4  ;;  %2489 = vmatprep.subr.bf16.mxu1 %v2860_v7 }
 0x438   :  { %2462 = vmatpush1.bf16.msra.mxu0 %v3107_v6  ;;  %2491 = vmatpush3.bf16.msra.mxu1 %v3117_v11 }
 0x439   :  { %2464 = vmatprep.subr.bf16.mxu0 %v3112_v9  ;;  %2492 = vmatprep.subr.bf16.mxu1 %v2860_v7 }
 0x43c   :  { %2466 = vmatpush1.bf16.msra.mxu0 %v3123_v12  ;;  %2494 = vmatpush3.bf16.msra.mxu1 %v3133_v14 }
 0x43d   :  { %2468 = vmatprep.subr.bf16.mxu0 %v3128_v13  ;;  %2495 = vmatprep.subr.bf16.mxu1 %v2860_v7 }
 0x440   :  { %2470 = vmatpush1.bf16.msra.mxu0 %v3139_v15  ;;  %2497 = vmatpush3.bf16.msra.mxu1 %v3149_v17 }
 0x441   :  { %2472 = vmatprep.subr.bf16.mxu0 %v3144_v16  ;;  %2498 = vmatprep.subr.bf16.mxu1 %v2860_v7 }
 0x444   :  { %2474 = vmatpush1.bf16.msra.mxu0 %v3155_v18  ;;  %2500 = vmatpush3.bf16.msra.mxu1 %v3165_v20 }
 0x445   :  { %2476 = vmatprep.subr.bf16.mxu0 %v3160_v19  ;;  %2501 = vmatprep.subr.bf16.mxu1 %v2860_v7 }
 0x448   :  { %2478 = vmatpush1.bf16.msra.mxu0 %v3171_v21  ;;  %2503 = vmatpush3.bf16.msra.mxu1 %v3181_v25 }
 0x449   :  { %2480 = vmatprep.subr.bf16.mxu0 %v3176_v22  ;;  %2504 = vmatprep.subr.bf16.mxu1 %v2860_v7 }
 0x44c   :  { %2482 = vmatpush1.bf16.msra.mxu0 %v3187_v28  ;;  %2506 = vmatpush3.bf16.msra.mxu1 %v3193_v31 }
 0x44d   :  { %2508 = vmatprep.subr.bf16.mxu0 %v3069_v3  ;;  %2539 = vmatprep.subr.bf16.mxu1 %v2860_v7 }
 0x502   :  { %v921_v43 = vpop.f32.mrb[6].mxu0  ;;  %v992_v44 = vpop.f32.mrb[6].mxu1 }
 0x503   :  { %v996_v46 = vadd.f32 %v921_v43, %v854_v42  ;;  %v923_v48 = vpop.f32.mrb[7].mxu0  ;;  %v2086_v49 = vpop.f32.mrb[7].mxu1  ;;  %v1013_v62 = vadd.f32 %v3581_v47, %v992_v44 }
 0x504   :  { %v1006_v51 = vadd.f32 %v1004_v45, %v923_v48  ;;  %v1192_v48 = vrot.slane %v1031_v33, 4 }
 0x505   :  { %v1793_v50 = vmul.f32 -1.442695, %v996_v46 }
 0x506   :  { %v1794_v52 = vmul.f32 -1.442695, %v1006_v51 }
 0x507   :  { %2724 = vpow2.f32 %v1793_v50 }
 0x508   :  { %2726 = vpow2.f32 %v1794_v52 }
 0x511   :  { %v2725_v53 = vpop.eup %2724 }
 0x512   :  { %v1000_v54 = vadd.f32 1.0, %v2725_v53  ;;  %v2727_v58 = vpop.eup %2726 }
 0x513   :  { %v1010_v60 = vadd.f32 1.0, %v2727_v58 }
 0x514   :  { %2728 = vrcp.f32 %v1000_v54 }
 0x515   :  { %2730 = vrcp.f32 %v1010_v60 }
 0x51e   :  { %v2729_v55 = vpop.eup %2728 }
 0x51f   :  { %v1014_v56 = vmul.f32 %v2729_v55, %v1013_v62  ;;  %v2731_v59 = vpop.eup %2730 }
 0x520   :  { %v1019_v23 = vsub.f32 1.0, %v2731_v59  ;;  %v1021_v27 = vmul.f32 %v2731_v59, %v3332_v39 }
 0x521   :  { %v1017_v57 = vadd.f32 %v1015_v61, %v1014_v56 }
 0x523   :  { %2732 = vtanh.f32 %v1017_v57  ;;  %v1208_v57 = vld [vmem:[#allocation2 + $0x1e] sm:$0x3f] }
 0x52d   :  { %v2733_v24 = vpop.eup %2732 }
 0x52e   :  { %v1020_v26 = vmul.f32 %v2733_v24, %v1019_v23  ;;  %v1358_v24 = vrot.slane %v1208_v57, 2 }
 0x530   :  { %v3376_v29 = vadd.f32 %v1021_v27, %v1020_v26 }
 0x532   :  { %1097 = vmatmul.mubr.f32.vlgmr.msra.gmra.mrb[8].mxu0 %v3376_v29  ;;  %2120 = vmatmul.mubr.f32.vlgmr.msra.gmra.mrb[8].mxu1 %v3376_v29  ;;  %v1023_v30 = vmul.f32 %v3582_v63, %v3376_v29 }
 0x533   :  { %2510 = vmatpush1.bf16.msra.mxu0 %v3073_v1  ;;  %2541 = vmatpush3.bf16.msra.mxu1 %v3087_v5 }
 0x534   :  { %v1024_v32 = vsel %vm491_vm4, %v1023_v30, 0.0  ;;  %2512 = vmatprep.subr.bf16.mxu0 %v3077_v0  ;;  %2542 = vmatprep.subr.bf16.mxu1 %v2860_v7 }
 0x535   :  { %1025 = vadd.xlane.f32.xlu1 %v1024_v32  ;;  %1273 = vmatprep.mubr.f32.mxu0 %v2861_v10 }
 0x536   :  { %2154 = vmatprep.mubr.msk.f32.mxu1 %vm2862_vm3, %v2861_v10 }
 0x537   :  { %2514 = vmatpush1.bf16.msra.mxu0 %v3083_v2  ;;  %2544 = vmatpush3.bf16.msra.mxu1 %v3098_v8 }
 0x538   :  { %2516 = vmatprep.subr.bf16.mxu0 %v3092_v4  ;;  %2545 = vmatprep.subr.bf16.mxu1 %v2860_v7 }
 0x53b   :  { %2518 = vmatpush1.bf16.msra.mxu0 %v3107_v6  ;;  %2547 = vmatpush3.bf16.msra.mxu1 %v3117_v11 }
 0x53c   :  { %2520 = vmatprep.subr.bf16.mxu0 %v3112_v9  ;;  %2548 = vmatprep.subr.bf16.mxu1 %v2860_v7 }
 0x53f   :  { %2522 = vmatpush1.bf16.msra.mxu0 %v3123_v12  ;;  %2550 = vmatpush3.bf16.msra.mxu1 %v3133_v14 }
 0x540   :  { %2524 = vmatprep.subr.bf16.mxu0 %v3128_v13  ;;  %2551 = vmatprep.subr.bf16.mxu1 %v2860_v7 }
 0x543   :  { %2526 = vmatpush1.bf16.msra.mxu0 %v3139_v15  ;;  %2553 = vmatpush3.bf16.msra.mxu1 %v3149_v17 }
 0x544   :  { %2528 = vmatprep.subr.bf16.mxu0 %v3144_v16  ;;  %2554 = vmatprep.subr.bf16.mxu1 %v2860_v7 }
 0x547   :  { %2530 = vmatpush1.bf16.msra.mxu0 %v3155_v18  ;;  %2556 = vmatpush3.bf16.msra.mxu1 %v3165_v20 }
 0x548   :  { %2532 = vmatprep.subr.bf16.mxu0 %v3160_v19  ;;  %2557 = vmatprep.subr.bf16.mxu1 %v2860_v7 }
 0x54b   :  { %2534 = vmatpush1.bf16.msra.mxu0 %v3171_v21  ;;  %2559 = vmatpush3.bf16.msra.mxu1 %v3181_v25 }
 0x54c   :  { %2536 = vmatprep.subr.bf16.mxu0 %v3176_v22  ;;  %2560 = vmatprep.subr.bf16.mxu1 %v2860_v7 }
 0x54f   :  { %2538 = vmatpush1.bf16.msra.mxu0 %v3187_v28  ;;  %2562 = vmatpush3.bf16.msra.mxu1 %v3193_v31 }
 0x550   :  { %2564 = vmatprep.subr.bf16.mxu0 %v3069_v3  ;;  %2595 = vmatprep.subr.bf16.mxu1 %v2860_v7 }
 0x605   :  { %v1098_v34 = vpop.f32.mrb[8].mxu0  ;;  %v1169_v35 = vpop.f32.mrb[8].mxu1 }
 0x606   :  { %v1173_v37 = vadd.f32 %v1098_v34, %v1031_v33  ;;  %v1100_v38 = vpop.f32.mrb[9].mxu0  ;;  %v2121_v39 = vpop.f32.mrb[9].mxu1  ;;  %v1190_v49 = vadd.f32 %v3581_v47, %v1169_v35 }
 0x607   :  { %v1183_v41 = vadd.f32 %v1181_v36, %v1100_v38 }
 0x608   :  { %v1795_v40 = vmul.f32 -1.442695, %v1173_v37 }
 0x609   :  { %v1796_v42 = vmul.f32 -1.442695, %v1183_v41 }
 0x60a   :  { %2734 = vpow2.f32 %v1795_v40 }
 0x60b   :  { %2736 = vpow2.f32 %v1796_v42 }
 0x614   :  { %v2735_v43 = vpop.eup %2734 }
 0x615   :  { %v1177_v44 = vadd.f32 1.0, %v2735_v43  ;;  %v2737_v45 = vpop.eup %2736 }
 0x616   :  { %v1187_v46 = vadd.f32 1.0, %v2737_v45 }
 0x617   :  { %2738 = vrcp.f32 %v1177_v44 }
 0x618   :  { %2740 = vrcp.f32 %v1187_v46 }
 0x621   :  { %v2739_v50 = vpop.eup %2738 }
 0x622   :  { %v1191_v51 = vmul.f32 %v2739_v50, %v1190_v49  ;;  %v2741_v53 = vpop.eup %2740 }
 0x623   :  { %v1196_v54 = vsub.f32 1.0, %v2741_v53  ;;  %v1198_v61 = vmul.f32 %v2741_v53, %v3376_v29  ;;  %v1562_v53 = vld [vmem:[#allocation2 + $0x2a] sm:$0x3f] }
 0x624   :  { %v1194_v52 = vadd.f32 %v1192_v48, %v1191_v51 }
 0x626   :  { %2742 = vtanh.f32 %v1194_v52 }
 0x630   :  { %v2743_v58 = vpop.eup %2742 }
 0x631   :  { %v1197_v60 = vmul.f32 %v2743_v58, %v1196_v54 }
 0x633   :  { %v3420_v62 = vadd.f32 %v1198_v61, %v1197_v60  ;;  %v1712_v60 = vrot.slane %v1562_v53, 2 }
 0x635   :  { %1274 = vmatmul.mubr.f32.vlgmr.msra.gmra.mrb[10].mxu0 %v3420_v62  ;;  %2155 = vmatmul.mubr.f32.vlgmr.msra.gmra.mrb[10].mxu1 %v3420_v62  ;;  %v1200_v55 = vmul.f32 %v3582_v63, %v3420_v62 }
 0x636   :  { %2566 = vmatpush1.bf16.msra.mxu0 %v3073_v1  ;;  %2597 = vmatpush3.bf16.msra.mxu1 %v3087_v5 }
 0x637   :  { %v1201_v56 = vsel %vm491_vm4, %v1200_v55, 0.0  ;;  %2568 = vmatprep.subr.bf16.mxu0 %v3077_v0  ;;  %2598 = vmatprep.subr.bf16.mxu1 %v2860_v7 }
 0x638   :  { %1202 = vadd.xlane.f32.xlu0 %v1201_v56  ;;  %1450 = vmatprep.mubr.f32.mxu0 %v2861_v10 }
 0x639   :  { %2189 = vmatprep.mubr.msk.f32.mxu1 %vm2862_vm3, %v2861_v10 }
 0x63a   :  { %2570 = vmatpush1.bf16.msra.mxu0 %v3083_v2  ;;  %2600 = vmatpush3.bf16.msra.mxu1 %v3098_v8 }
 0x63b   :  { %2572 = vmatprep.subr.bf16.mxu0 %v3092_v4  ;;  %2601 = vmatprep.subr.bf16.mxu1 %v2860_v7 }
 0x63e   :  { %2574 = vmatpush1.bf16.msra.mxu0 %v3107_v6  ;;  %2603 = vmatpush3.bf16.msra.mxu1 %v3117_v11 }
 0x63f   :  { %2576 = vmatprep.subr.bf16.mxu0 %v3112_v9  ;;  %2604 = vmatprep.subr.bf16.mxu1 %v2860_v7 }
 0x642   :  { %2578 = vmatpush1.bf16.msra.mxu0 %v3123_v12  ;;  %2606 = vmatpush3.bf16.msra.mxu1 %v3133_v14 }
 0x643   :  { %2580 = vmatprep.subr.bf16.mxu0 %v3128_v13  ;;  %2607 = vmatprep.subr.bf16.mxu1 %v2860_v7 }
 0x646   :  { %2582 = vmatpush1.bf16.msra.mxu0 %v3139_v15  ;;  %2609 = vmatpush3.bf16.msra.mxu1 %v3149_v17 }
 0x647   :  { %2584 = vmatprep.subr.bf16.mxu0 %v3144_v16  ;;  %2610 = vmatprep.subr.bf16.mxu1 %v2860_v7 }
 0x64a   :  { %2586 = vmatpush1.bf16.msra.mxu0 %v3155_v18  ;;  %2612 = vmatpush3.bf16.msra.mxu1 %v3165_v20 }
 0x64b   :  { %2588 = vmatprep.subr.bf16.mxu0 %v3160_v19  ;;  %2613 = vmatprep.subr.bf16.mxu1 %v2860_v7 }
 0x64e   :  { %2590 = vmatpush1.bf16.msra.mxu0 %v3171_v21  ;;  %2615 = vmatpush3.bf16.msra.mxu1 %v3181_v25 }
 0x64f   :  { %2592 = vmatprep.subr.bf16.mxu0 %v3176_v22  ;;  %2616 = vmatprep.subr.bf16.mxu1 %v2860_v7 }
 0x652   :  { %2594 = vmatpush1.bf16.msra.mxu0 %v3187_v28  ;;  %2618 = vmatpush3.bf16.msra.mxu1 %v3193_v31 }
 0x653   :  { %2620 = vmatprep.subr.bf16.mxu0 %v3069_v3  ;;  %2651 = vmatprep.subr.bf16.mxu1 %v2860_v7  ;;  %v1369_v3 = vrot.slane %v1208_v57, 4 }
 0x708   :  { %v1275_v59 = vpop.f32.mrb[10].mxu0  ;;  %v1346_v23 = vpop.f32.mrb[10].mxu1 }
 0x709   :  { %v1350_v26 = vadd.f32 %v1275_v59, %v1208_v57  ;;  %v1277_v27 = vpop.f32.mrb[11].mxu0  ;;  %v2156_v29 = vpop.f32.mrb[11].mxu1  ;;  %v1367_v38 = vadd.f32 %v3581_v47, %v1346_v23 }
 0x70a   :  { %v1360_v32 = vadd.f32 %v1358_v24, %v1277_v27  ;;  %v1723_v29 = vrot.slane %v1562_v53, 4 }
 0x70b   :  { %v1797_v30 = vmul.f32 -1.442695, %v1350_v26 }
 0x70c   :  { %v1798_v33 = vmul.f32 -1.442695, %v1360_v32 }
 0x70d   :  { %2744 = vpow2.f32 %v1797_v30 }
 0x70e   :  { %2746 = vpow2.f32 %v1798_v33 }
 0x717   :  { %v2745_v34 = vpop.eup %2744 }
 0x718   :  { %v1354_v35 = vadd.f32 1.0, %v2745_v34  ;;  %v2747_v36 = vpop.eup %2746 }
 0x719   :  { %v1364_v37 = vadd.f32 1.0, %v2747_v36 }
 0x71a   :  { %2748 = vrcp.f32 %v1354_v35 }
 0x71b   :  { %2750 = vrcp.f32 %v1364_v37 }
 0x724   :  { %v2749_v39 = vpop.eup %2748 }
 0x725   :  { %v1368_v40 = vmul.f32 %v2749_v39, %v1367_v38  ;;  %v2751_v42 = vpop.eup %2750 }
 0x726   :  { %v1373_v43 = vsub.f32 1.0, %v2751_v42  ;;  %v1375_v46 = vmul.f32 %v2751_v42, %v3420_v62 }
 0x727   :  { %v1371_v41 = vadd.f32 %v1369_v3, %v1368_v40 }
 0x729   :  { %2752 = vtanh.f32 %v1371_v41 }
 0x733   :  { %v2753_v44 = vpop.eup %2752 }
 0x734   :  { %v1374_v45 = vmul.f32 %v2753_v44, %v1373_v43 }
 0x736   :  { %v3464_v48 = vadd.f32 %v1375_v46, %v1374_v45 }
 0x738   :  { %1451 = vmatmul.mubr.f32.vlgmr.msra.gmra.mrb[12].mxu0 %v3464_v48  ;;  %2190 = vmatmul.mubr.f32.vlgmr.msra.gmra.mrb[12].mxu1 %v3464_v48  ;;  %v1377_v49 = vmul.f32 %v3582_v63, %v3464_v48 }
 0x739   :  { %2622 = vmatpush1.bf16.msra.mxu0 %v3073_v1  ;;  %2653 = vmatpush3.bf16.msra.mxu1 %v3087_v5  ;;  %v1385_v1 = vld [vmem:[#allocation2 + $0x24] sm:$0x3f] }
 0x73a   :  { %v1378_v50 = vsel %vm491_vm4, %v1377_v49, 0.0  ;;  %2624 = vmatprep.subr.bf16.mxu0 %v3077_v0  ;;  %2654 = vmatprep.subr.bf16.mxu1 %v2860_v7  ;;  %v1535_v5 = vrot.slane %v1385_v1, 2 }
 0x73b   :  { %1379 = vadd.xlane.f32.xlu1 %v1378_v50  ;;  %1627 = vmatprep.mubr.f32.mxu0 %v2861_v10 }
 0x73c   :  { %2224 = vmatprep.mubr.msk.f32.mxu1 %vm2862_vm3, %v2861_v10 }
 0x73d   :  { %2626 = vmatpush1.bf16.msra.mxu0 %v3083_v2  ;;  %2656 = vmatpush3.bf16.msra.mxu1 %v3098_v8 }
 0x73e   :  { %2628 = vmatprep.subr.bf16.mxu0 %v3092_v4  ;;  %2657 = vmatprep.subr.bf16.mxu1 %v2860_v7 }
 0x741   :  { %2630 = vmatpush1.bf16.msra.mxu0 %v3107_v6  ;;  %2659 = vmatpush3.bf16.msra.mxu1 %v3117_v11 }
 0x742   :  { %2632 = vmatprep.subr.bf16.mxu0 %v3112_v9  ;;  %2660 = vmatprep.subr.bf16.mxu1 %v2860_v7 }
 0x745   :  { %2634 = vmatpush1.bf16.msra.mxu0 %v3123_v12  ;;  %2662 = vmatpush3.bf16.msra.mxu1 %v3133_v14 }
 0x746   :  { %2636 = vmatprep.subr.bf16.mxu0 %v3128_v13  ;;  %2663 = vmatprep.subr.bf16.mxu1 %v2860_v7 }
 0x749   :  { %2638 = vmatpush1.bf16.msra.mxu0 %v3139_v15  ;;  %2665 = vmatpush3.bf16.msra.mxu1 %v3149_v17  ;;  %v1546_v15 = vrot.slane %v1385_v1, 4 }
 0x74a   :  { %2640 = vmatprep.subr.bf16.mxu0 %v3144_v16  ;;  %2666 = vmatprep.subr.bf16.mxu1 %v2860_v7 }
 0x74d   :  { %2642 = vmatpush1.bf16.msra.mxu0 %v3155_v18  ;;  %2668 = vmatpush3.bf16.msra.mxu1 %v3165_v20 }
 0x74e   :  { %2644 = vmatprep.subr.bf16.mxu0 %v3160_v19  ;;  %2669 = vmatprep.subr.bf16.mxu1 %v2860_v7 }
 0x751   :  { %2646 = vmatpush1.bf16.msra.mxu0 %v3171_v21  ;;  %2671 = vmatpush3.bf16.msra.mxu1 %v3181_v25 }
 0x752   :  { %2648 = vmatprep.subr.bf16.mxu0 %v3176_v22  ;;  %2672 = vmatprep.subr.bf16.mxu1 %v2860_v7 }
 0x755   :  { %2650 = vmatpush1.bf16.msra.mxu0 %v3187_v28  ;;  %2674 = vmatpush3.bf16.msra.mxu1 %v3193_v31 }
 0x80b   :  { %v1452_v0 = vpop.f32.mrb[12].mxu0  ;;  %v1523_v2 = vpop.f32.mrb[12].mxu1 }
 0x80c   :  { %v1527_v4 = vadd.f32 %v1452_v0, %v1385_v1  ;;  %v1454_v8 = vpop.f32.mrb[13].mxu0  ;;  %v2191_v10 = vpop.f32.mrb[13].mxu1  ;;  %v1544_v16 = vadd.f32 %v3581_v47, %v1523_v2 }
 0x80d   :  { %v1537_v9 = vadd.f32 %v1535_v5, %v1454_v8 }
 0x80e   :  { %v1799_v6 = vmul.f32 -1.442695, %v1527_v4 }
 0x80f   :  { %v1800_v11 = vmul.f32 -1.442695, %v1537_v9 }
 0x810   :  { %2754 = vpow2.f32 %v1799_v6 }
 0x811   :  { %2756 = vpow2.f32 %v1800_v11 }
 0x81a   :  { %v2755_v12 = vpop.eup %2754 }
 0x81b   :  { %v1531_v13 = vadd.f32 1.0, %v2755_v12  ;;  %v2757_v7 = vpop.eup %2756 }
 0x81c   :  { %v1541_v14 = vadd.f32 1.0, %v2757_v7 }
 0x81d   :  { %2758 = vrcp.f32 %v1531_v13 }
 0x81e   :  { %2760 = vrcp.f32 %v1541_v14 }
 0x827   :  { %v2759_v17 = vpop.eup %2758 }
 0x828   :  { %v1545_v18 = vmul.f32 %v2759_v17, %v1544_v16  ;;  %v2761_v20 = vpop.eup %2760 }
 0x829   :  { %v1550_v21 = vsub.f32 1.0, %v2761_v20  ;;  %v1552_v28 = vmul.f32 %v2761_v20, %v3464_v48 }
 0x82a   :  { %v1548_v19 = vadd.f32 %v1546_v15, %v1545_v18 }
 0x82c   :  { %2762 = vtanh.f32 %v1548_v19 }
 0x836   :  { %v2763_v22 = vpop.eup %2762 }
 0x837   :  { %v1551_v25 = vmul.f32 %v2763_v22, %v1550_v21 }
 0x839   :  { %v1553_v31 = vadd.f32 %v1552_v28, %v1551_v25 }
 0x83b   :  { %1628 = vmatmul.mubr.f32.vlgmr.msra.gmra.mrb[14].mxu0 %v1553_v31  ;;  %2225 = vmatmul.mubr.f32.vlgmr.msra.gmra.mrb[14].mxu1 %v1553_v31  ;;  %v1554_v51 = vmul.f32 %v3582_v63, %v1553_v31 }
 0x83d   :  { %v1555_v52 = vsel %vm491_vm4, %v1554_v51, 0.0 }
 0x83e   :  { %1556 = vadd.xlane.f32.xlu0 %v1555_v52 }
 0x90e   :  { %v1629_v54 = vpop.f32.mrb[14].mxu0  ;;  %v1700_v58 = vpop.f32.mrb[14].mxu1 }
 0x90f   :  { %v1704_v61 = vadd.f32 %v1629_v54, %v1562_v53  ;;  %v1631_v62 = vpop.f32.mrb[15].mxu0  ;;  %v2226_v55 = vpop.f32.mrb[15].mxu1  ;;  %v1721_v30 = vadd.f32 %v3581_v47, %v1700_v58 }
 0x910   :  { %v1714_v57 = vadd.f32 %v1712_v60, %v1631_v62 }
 0x911   :  { %v1801_v56 = vmul.f32 -1.442695, %v1704_v61 }
 0x912   :  { %v1802_v59 = vmul.f32 -1.442695, %v1714_v57 }
 0x913   :  { %2764 = vpow2.f32 %v1801_v56 }
 0x914   :  { %2766 = vpow2.f32 %v1802_v59 }
 0x91d   :  { %v2765_v23 = vpop.eup %2764 }
 0x91e   :  { %v1708_v24 = vadd.f32 1.0, %v2765_v23  ;;  %v2767_v26 = vpop.eup %2766 }
 0x91f   :  { %v1718_v27 = vadd.f32 1.0, %v2767_v26 }
 0x920   :  { %2768 = vrcp.f32 %v1708_v24 }
 0x921   :  { %2770 = vrcp.f32 %v1718_v27 }
 0x92a   :  { %v2769_v32 = vpop.eup %2768 }
 0x92b   :  { %v1722_v33 = vmul.f32 %v2769_v32, %v1721_v30  ;;  %v2771_v35 = vpop.eup %2770 }
 0x92c   :  { %v1727_v36 = vsub.f32 1.0, %v2771_v35  ;;  %v1729_v38 = vmul.f32 %v2771_v35, %v1553_v31 }
 0x92d   :  { %v1725_v34 = vadd.f32 %v1723_v29, %v1722_v33 }
 0x92f   :  { %2772 = vtanh.f32 %v1725_v34 }
 0x939   :  { %v2773_v37 = vpop.eup %2772 }
 0x93a   :  { %v1728_v3 = vmul.f32 %v2773_v37, %v1727_v36 }
 0x93c   :  { %v1730_v39 = vadd.f32 %v1729_v38, %v1728_v3 }
 0x93e   :  { %v1731_v40 = vmul.f32 %v3582_v63, %v1730_v39  ;;  %1739 = vst [vmem:[#allocation8] sm:$0x3] %v1730_v39 }
 0x940   :  { %v1732_v41 = vsel %vm491_vm4, %v1731_v40, 0.0 }
 0x941   :  { %1733 = vadd.xlane.f32.xlu1 %v1732_v41 }
 0x942   :  { %2807 = shalt.err (!%p2804_p13)
}
 0x943   :  { %s2808_s19 = scalar_lea.hbm %s3555_s9, 32 }
 0x944   :  { %p2809_p0 = scmp.ne.s32.totalorder %s3555_s9, %s2808_s19  ;;  %p2812_p1 = scmp.lt.u32.totalorder %s2808_s19, %s3555_s9 }
 0x946   :  { %p2814_p2 = pnand %p2812_p1, %p2809_p0 }
 0x948   :  { %2817 = shalt.err (!%p2814_p2)
}
 0x949   :  { %1759 = dma.vmem_to_hbm [thread:$0]  %s1757_s15, 32, %s3555_s9, [#allocation9]   ;;  %v494_v47 = vpop.xlane.xlu0 %493  ;;  %v849_v63 = vpop.xlane.xlu1 %848  ;;  %v495_v43 = vstv %s3553_s7  ;;  %v3583_v48 = vld [vmem:[#allocation13_spill] sm:$0xff] }
 0x94a   :  { %v496_v46 = vadd.f32 %v495_v43, %v494_v47  ;;  %vm497_vm5 = vcmp.eq.s32.totalorder %v3583_v48, 0  ;;  %vm674_vm6 = vcmp.eq.s32.totalorder %v3583_v48, 1  ;;  %v850_v50 = vadd.f32 %v849_v63, %v495_v43  ;;  %s2864_s7 = smov [#allocation7]  }
 0x94b   :  { %vm851_vm7 = vcmp.eq.s32.totalorder %v3583_v48, 2  ;;  %vm1028_vm8 = vcmp.eq.s32.totalorder %v3583_v48, 3  ;;  %vm1205_vm9 = vcmp.eq.s32.totalorder %v3583_v48, 4  ;;  %vm1382_vm10 = vcmp.eq.s32.totalorder %v3583_v48, 5  ;;  %s1746_s9 = sshll.u32 %s2864_s7, 4  ;;  %s1747_s9 = int_to_ptr.vmem [resolvable:$true] %s1746_s9 }
 0x94c   :  { %v498_v5 = vsel %vm497_vm5, %v496_v46, 0.0  ;;  %vm1559_vm11 = vcmp.eq.s32.totalorder %v3583_v48, 6  ;;  %vm1736_vm12 = vcmp.eq.s32.totalorder %v3583_v48, 7  ;;  %s2818_s3 = scalar_lea.vmem %s1747_s9, 32  ;;  %p2823_p4 = scmp.lt.s32.totalorder %s1747_s9, %s1747_s9 }
 0x94d   :  { %v672_v42 = vpop.xlane.xlu0 %671  ;;  %v1026_v44 = vpop.xlane.xlu1 %1025  ;;  %p2819_p3 = scmp.ne.s32.totalorder %s1747_s9, %s2818_s3  ;;  %p2824_p5 = scmp.lt.s32.totalorder %s2818_s3, %s2818_s3 }
 0x94e   :  { %v673_v49 = vadd.f32 %v672_v42, %v495_v43  ;;  %v1027_v0 = vadd.f32 %v1026_v44, %v495_v43 }
 0x94f   :  { %p2825_p6 = por %p2824_p5, %p2823_p4 }
 0x950   :  { %v675_v8 = vsel %vm674_vm6, %v673_v49, %v498_v5 }
 0x951   :  { %v1203_v45 = vpop.xlane.xlu0 %1202  ;;  %v1380_v1 = vpop.xlane.xlu1 %1379  ;;  %v852_v6 = vsel %vm851_vm7, %v850_v50, %v675_v8  ;;  %p2826_p7 = pnand %p2825_p6, %p2819_p3 }
 0x952   :  { %v1204_v4 = vadd.f32 %v1203_v45, %v495_v43  ;;  %v1381_v10 = vadd.f32 %v1380_v1, %v495_v43  ;;  %v1029_v11 = vsel %vm1028_vm8, %v1027_v0, %v852_v6 }
 0x954   :  { %v1206_v12 = vsel %vm1205_vm9, %v1204_v4, %v1029_v11 }
 0x955   :  { %v1557_v2 = vpop.xlane.xlu0 %1556  ;;  %v1383_v7 = vsel %vm1382_vm10, %v1381_v10, %v1206_v12 }
 0x956   :  { %v1558_v9 = vadd.f32 %v1557_v2, %v495_v43 }
 0x958   :  { %v1560_v15 = vsel %vm1559_vm11, %v1558_v9, %v1383_v7 }
 0x9ce   :  { %v1734_v13 = vpop.xlane.xlu1 %1733 }
 0x9cf   :  { %v1735_v14 = vadd.f32 %v1734_v13, %v495_v43 }
 0x9d1   :  { %v1737_v16 = vsel %vm1736_vm12, %v1735_v14, %v1560_v15 }
 0x9d2   :  { %1738 = vst [vmem:[#allocation7] sm:$0x3] %v1737_v16 }
 0x9d3   :  { %2829 = shalt.err (!%p2826_p7)
}
 0x9d4   :  { %s2830_s29 = scalar_lea.hbm %s3554_s8, 32 }
 0x9d5   :  { %p2831_p8 = scmp.ne.s32.totalorder %s3554_s8, %s2830_s29  ;;  %p2834_p9 = scmp.lt.u32.totalorder %s2830_s29, %s3554_s8 }
 0x9d7   :  { %p2836_p10 = pnand %p2834_p9, %p2831_p8 }
 0x9d9   :  { %2839 = shalt.err (!%p2836_p10)
}
 0x9da   :  { %1749 = dma.vmem_to_hbm [thread:$0]  %s1747_s9, 32, %s3554_s8, [#allocation6]  }
 0x9db   :  { %2846 = dma.done.wait [#allocation6], 32  }
 0x9dc   :  { %2847 = vsyncadd [#allocation6], 4294967264 }
 0x9dd   :  { %2848 = dma.done.wait [#allocation9], 32  }
 0x9de   :  { %2849 = vsyncadd [#allocation9], 4294967264 }
 0x9df   :  { %1766 = vsyncpa [#allocation5], 1 }
 0x9e0   :  { %1767 = vsyncpa [#allocation6], 1 }
 0x9e1   :  { %1768 = vsyncpa [#allocation9], 1 }

</bundles_post_ra>
